<compile_context>
chip_gen: v7x
topology: tpu7x:2x2x1
jax: 0.10.0
libtpu: 0.0.40
codegen_flags: <defaults>
</compile_context>

<pallas_src>
import functools

import jax
import jax.numpy as jnp
from jax import lax
from jax.experimental import pallas as pl
from jax.experimental.pallas import tpu as pltpu


# Contract the last dim of both operands ("NT" matmul) — MXU consumes it natively.
_NT_DIMS = (((1,), (1,)), ((), ()))


def _clip_loss_kernel(scalars_ref, img_ref, txt_ref, *refs,
                      n_valid, n_pad, with_lpi, with_lpt):
    # --- unpack optional outputs + scratch ---
    k = 0
    lpi_ref = refs[k] if with_lpi else None
    k += int(with_lpi)
    lpt_ref = refs[k] if with_lpt else None
    k += int(with_lpt)
    loss_ref = refs[k]
    l_row, l_col, acc = refs[k + 1], refs[k + 2], refs[k + 3]

    i = pl.program_id(0)              # row-tile index (outer)
    j = pl.program_id(1)              # col-tile index (inner, sequential)
    ni = pl.num_programs(0)
    nj = pl.num_programs(1)

    scale = scalars_ref[0]            # logit_scale (already exp'ed, CLIP convention)
    shift = scalars_ref[1]            # upper bound on |logit| (computed in wrapper)

    img_t = img_ref[...]              # (tm, D)  native/compute dtype -> MXU
    txt_t = txt_ref[...]              # (tn, D)
    tm = img_t.shape[0]
    tn = txt_t.shape[0]
    masked = n_valid != n_pad         # static python bool

    # --- single MXU matmul per tile; f32 accumulation; scale applied to f32 tile ---
    tile = lax.dot_general(img_t, txt_t, dimension_numbers=_NT_DIMS,
                           preferred_element_type=jnp.float32) * scale      # (tm, tn)

    if with_lpi:
        lpi_ref[...] = tile.astype(lpi_ref.dtype)
    if with_lpt:
        lpt_ref[...] = tile.T.astype(lpt_ref.dtype)   # logits_per_text == lpi^T

    # --- accumulator init ---
    @pl.when((i == 0) & (j == 0))
    def _():
        acc[0] = jnp.float32(0.0)                     # sum_i lse_row_i
        acc[1] = jnp.float32(0.0)                     # sum_i diag_i
        l_col[...] = jnp.zeros_like(l_col)

    @pl.when(j == 0)
    def _():
        l_row[...] = jnp.zeros_like(l_row)

    # --- ONE exp per tile: fixed shift >= max|logit|, so exp never overflows and
    #     the same e feeds the row-LSE and column-LSE accumulations.
    e = jnp.exp(tile - shift)                         # (tm, tn) in (0, 1]

    if masked:
        col_valid = (j * tn + lax.broadcasted_iota(jnp.int32, (1, tn), 1)) < n_valid
        row_valid = (i * tm + lax.broadcasted_iota(jnp.int32, (tm, 1), 0)) < n_valid
        e_row = jnp.where(col_valid, e, 0.0)          # padded text cols out of row LSE
        e_col = jnp.where(row_valid, e, 0.0)          # padded image rows out of col LSE
    else:
        e_row = e
        e_col = e

    # row-direction sum-exp (CE over rows of logits_per_image)
    l_row[...] = l_row[...] + jnp.sum(e_row, axis=1, keepdims=True)
    # column-direction sum-exp (CE over rows of logits_per_text == columns of lpi)
    l_col[pl.ds(j, 1), :] = l_col[pl.ds(j, 1), :] + jnp.sum(e_col, axis=0, keepdims=True)

    # --- diagonal (label) term straight from the already-scaled MXU tile ---
    @pl.when(i == j)
    def _():
        rid = lax.broadcasted_iota(jnp.int32, (tm, tn), 0)
        cid = lax.broadcasted_iota(jnp.int32, (tm, tn), 1)
        dmask = rid == cid
        if masked:
            dmask = dmask & ((i * tm + rid) < n_valid)
        acc[1] = acc[1] + jnp.sum(jnp.where(dmask, tile, 0.0))

    # --- finalize the row LSE of this row tile ---
    @pl.when(j == nj - 1)
    def _():
        lse_row = shift + jnp.log(l_row[...])         # (tm, 1)
        if masked:
            rv = (i * tm + lax.broadcasted_iota(jnp.int32, (tm, 1), 0)) < n_valid
            lse_row = jnp.where(rv, lse_row, 0.0)
        acc[0] = acc[0] + jnp.sum(lse_row)

    # --- final scalar loss, written once at the last grid step ---
    @pl.when((i == ni - 1) & (j == nj - 1))
    def _():
        lse_col = shift + jnp.log(l_col[...])         # (nj, tn)
        if masked:
            gid = (lax.broadcasted_iota(jnp.int32, l_col.shape, 0) * tn
                   + lax.broadcasted_iota(jnp.int32, l_col.shape, 1))
            lse_col = jnp.where(gid < n_valid, lse_col, 0.0)
        n = jnp.float32(n_valid)
        # (CE_img + CE_txt)/2 = (sum lse_row + sum lse_col)/(2N) - sum diag / N
        loss_ref[0, 0] = (acc[0] + jnp.sum(lse_col)) / (2.0 * n) - acc[1] / n


def clip_loss(image_features, text_features, logit_scale, *,
              block=256,
              compute_dtype=None,
              return_logits_per_image=True,
              return_logits_per_text=True):
    """Single-device ClipLoss forward.

    Returns (total_loss, logits_per_image, logits_per_text).  Disabled logits
    outputs come back as None (loss-only mode avoids all N^2 HBM stores).
    """
    N, D = image_features.shape
    assert text_features.shape == (N, D)
    assert block % 128 == 0 and block > 0

    out_dtype = image_features.dtype

    img = image_features
    txt = text_features
    if compute_dtype is not None and jnp.dtype(compute_dtype) != jnp.dtype(img.dtype):
        img = img.astype(compute_dtype)               # halves DMA + bf16 MXU throughput
        txt = txt.astype(compute_dtype)

    # logit_scale (CLIP passes exp(temperature) > 0) and a safe global shift bound:
    # |logit_ij| = |scale| * |img_i . txt_j| <= |scale| * max||img|| * max||txt||.
    scale = jnp.asarray(logit_scale, jnp.float32).reshape(())
    mx_i = jnp.sqrt(jnp.max(jnp.sum(jnp.square(img.astype(jnp.float32)), axis=-1)))
    mx_t = jnp.sqrt(jnp.max(jnp.sum(jnp.square(txt.astype(jnp.float32)), axis=-1)))
    shift = jnp.abs(scale) * mx_i * mx_t
    scalars = jnp.stack([scale, shift])

    # Square tiles (tm == tn) so label-diagonal entries live on i == j tiles.
    tile = block if N >= block else 128
    n_pad = pl.cdiv(N, tile) * tile
    if n_pad != N:
        pad = n_pad - N
        img = jnp.pad(img, ((0, pad), (0, 0)))
        txt = jnp.pad(txt, ((0, pad), (0, 0)))
    tm = tn = tile
    ni = nj = n_pad // tile

    kernel = functools.partial(
        _clip_loss_kernel, n_valid=N, n_pad=n_pad,
        with_lpi=return_logits_per_image, with_lpt=return_logits_per_text)

    out_specs = []
    out_shape = []
    if return_logits_per_image:
        out_specs.append(pl.BlockSpec((tm, tn), lambda i, j: (i, j)))
        out_shape.append(jax.ShapeDtypeStruct((n_pad, n_pad), out_dtype))
    if return_logits_per_text:
        out_specs.append(pl.BlockSpec((tn, tm), lambda i, j: (j, i)))   # transposed write
        out_shape.append(jax.ShapeDtypeStruct((n_pad, n_pad), out_dtype))
    out_specs.append(pl.BlockSpec(memory_space=pltpu.SMEM))             # scalar loss
    out_shape.append(jax.ShapeDtypeStruct((1, 1), jnp.float32))

    # Rough per-step VMEM working set (2-deep pipelining kept; see review note on
    # only going Buffered(3) if a bundle dump shows exposed DMA).
    in_isz = jnp.dtype(img.dtype).itemsize
    out_isz = jnp.dtype(out_dtype).itemsize
    n_mats = int(return_logits_per_image) + int(return_logits_per_text)
    est = (2 * 2 * tile * D * in_isz                  # image + text tiles, double-buffered
           + n_mats * 2 * tile * tile * out_isz       # logits output tiles
           + tile * 128 * 4                           # l_row (lane-padded)
           + max(nj, 8) * tile * 4                    # l_col
           + 4 * tile * tile * 4)                     # f32 tile/exp temporaries headroom
    vmem_limit = int(min(max(32 * 2 ** 20, 2 * est), 96 * 2 ** 20))

    outs = pl.pallas_call(
        kernel,
        grid=(ni, nj),
        in_specs=[
            pl.BlockSpec(memory_space=pltpu.SMEM),            # [scale, shift]
            pl.BlockSpec((tm, D), lambda i, j: (i, 0)),       # image row tile
            pl.BlockSpec((tn, D), lambda i, j: (j, 0)),       # text col tile
        ],
        out_specs=tuple(out_specs),
        out_shape=tuple(out_shape),
        scratch_shapes=[
            pltpu.VMEM((tm, 1), jnp.float32),                 # l_row: running row sum-exp
            pltpu.VMEM((nj, tn), jnp.float32),                # l_col: lane-dense col sum-exp
            pltpu.SMEM((2,), jnp.float32),                    # [sum lse_row, sum diag]
        ],
        compiler_params=pltpu.CompilerParams(
            # Scalar loss + column accumulator couple row tiles -> both axes sequential.
            dimension_semantics=("arbitrary", "arbitrary"),
            vmem_limit_bytes=vmem_limit,
        ),
    )(scalars, img, txt)

    outs = list(outs)
    lpi = None
    lpt = None
    if return_logits_per_image:
        lpi = outs.pop(0)
        if n_pad != N:
            lpi = lpi[:N, :N]
    if return_logits_per_text:
        lpt = outs.pop(0)
        if n_pad != N:
            lpt = lpt[:N, :N]
    loss = outs.pop(0)[0, 0]
    return loss, lpi, lpt


def _reference(image_features, text_features, logit_scale):
    hi = jax.lax.Precision.HIGHEST
    lpi = logit_scale * jnp.matmul(image_features, text_features.T, precision=hi)
    lpt = logit_scale * jnp.matmul(text_features, image_features.T, precision=hi)
    labels = jnp.arange(lpi.shape[0])

    def ce(logits):
        logp = jax.nn.log_softmax(logits, axis=-1)
        return -jnp.mean(jnp.take_along_axis(logp, labels[:, None], axis=-1))

    return (ce(lpi) + ce(lpt)) / 2.0, lpi, lpt


if __name__ == "__main__":
    key = jax.random.PRNGKey(0)
    k1, k2, k3, k4 = jax.random.split(key, 4)
    logit_scale = jnp.float32(10.0)    # exp(learned temperature)

    def _norm(x):
        return x / jnp.linalg.norm(x, axis=-1, keepdims=True)

    # CLIP normalizes features before the loss; keeps logits O(logit_scale).
    N, D = 256, 128
    img = _norm(jax.random.normal(k1, (N, D), dtype=jnp.float32))
    txt = _norm(jax.random.normal(k2, (N, D), dtype=jnp.float32))

    # 1) default 256-tile path
    loss, lpi, lpt = clip_loss(img, txt, logit_scale)
    jax.block_until_ready((loss, lpi, lpt))
    ref_loss, ref_lpi, ref_lpt = _reference(img, txt, logit_scale)
    assert jnp.allclose(lpi, ref_lpi, rtol=1e-4, atol=1e-3), float(jnp.max(jnp.abs(lpi - ref_lpi)))
    assert jnp.allclose(lpt, ref_lpt, rtol=1e-4, atol=1e-3), float(jnp.max(jnp.abs(lpt - ref_lpt)))
    assert jnp.allclose(loss, ref_loss, rtol=1e-4, atol=1e-3), (float(loss), float(ref_loss))

    # 2) multi-tile grid (2x2) exercising the cross-tile accumulators
    loss2, lpi2, lpt2 = clip_loss(img, txt, logit_scale, block=128)
    jax.block_until_ready((loss2, lpi2, lpt2))
    assert jnp.allclose(lpi2, ref_lpi, rtol=1e-4, atol=1e-3)
    assert jnp.allclose(lpt2, ref_lpt, rtol=1e-4, atol=1e-3)
    assert jnp.allclose(loss2, ref_loss, rtol=1e-4, atol=1e-3)

    # 3) unaligned N -> padding + in-kernel masking path
    Nu = 200
    img_u = _norm(jax.random.normal(k3, (Nu, D), dtype=jnp.float32))
    txt_u = _norm(jax.random.normal(k4, (Nu, D), dtype=jnp.float32))
    loss3, lpi3, lpt3 = clip_loss(img_u, txt_u, logit_scale, block=128)
    jax.block_until_ready((loss3, lpi3, lpt3))
    ref_loss_u, ref_lpi_u, ref_lpt_u = _reference(img_u, txt_u, logit_scale)
    assert lpi3.shape == (Nu, Nu) and lpt3.shape == (Nu, Nu)
    assert jnp.allclose(lpi3, ref_lpi_u, rtol=1e-4, atol=1e-3)
    assert jnp.allclose(lpt3, ref_lpt_u, rtol=1e-4, atol=1e-3)
    assert jnp.allclose(loss3, ref_loss_u, rtol=1e-4, atol=1e-3)

    # 4) bf16 MXU inputs + loss-only mode (no N^2 outputs, no in-kernel transpose)
    loss4, none_lpi, none_lpt = clip_loss(
        img, txt, logit_scale, compute_dtype=jnp.bfloat16,
        return_logits_per_image=False, return_logits_per_text=False)
    jax.block_until_ready(loss4)
    assert none_lpi is None and none_lpt is None
    ref_loss_bf, _, _ = _reference(img.astype(jnp.bfloat16).astype(jnp.float32),
                                   txt.astype(jnp.bfloat16).astype(jnp.float32),
                                   logit_scale)
    assert jnp.allclose(loss4, ref_loss_bf, atol=2e-2), (float(loss4), float(ref_loss_bf))

    print("KERNEL_OK")
</pallas_src>

<mosaic_0001>
module attributes {stable_mosaic.version = 11 : i64} {
  func.func @_clip_loss_kernel(%arg0: i32, %arg1: i32, %arg2: memref<2xf32, #tpu.memory_space<smem>>, %arg3: memref<256x128xf32, #tpu.memory_space<vmem>>, %arg4: memref<256x128xf32, #tpu.memory_space<vmem>>, %arg5: memref<256x256xf32, #tpu.memory_space<vmem>>, %arg6: memref<256x256xf32, #tpu.memory_space<vmem>>, %arg7: memref<1x1xf32, #tpu.memory_space<smem>>, %arg8: memref<256x1xf32, #tpu.memory_space<vmem>>, %arg9: memref<1x256xf32, #tpu.memory_space<vmem>>, %arg10: memref<2xf32, #tpu.memory_space<smem>>) attributes {dimension_semantics = [#tpu.dimension_semantics<arbitrary>, #tpu.dimension_semantics<arbitrary>], iteration_bounds = array<i64: 1, 1>, scalar_prefetch = 0 : i64, scratch_operands = 3 : i64, tpu.core_type = #tpu.core_type<tc>, window_params = [{transform_indices = @transform_0, window_bounds = array<i64: 2>}, {transform_indices = @transform_1, window_bounds = array<i64: 256, 128>}, {transform_indices = @transform_2, window_bounds = array<i64: 256, 128>}, {transform_indices = @transform_3, window_bounds = array<i64: 256, 256>}, {transform_indices = @transform_4, window_bounds = array<i64: 256, 256>}, {transform_indices = @transform_5, window_bounds = array<i64: 1, 1>}]} {
    %c0 = arith.constant 0 : index
    %0 = memref.load %arg2[%c0] : memref<2xf32, #tpu.memory_space<smem>>
    %c1 = arith.constant 1 : index
    %1 = memref.load %arg2[%c1] : memref<2xf32, #tpu.memory_space<smem>>
    %c0_0 = arith.constant 0 : index
    %c0_1 = arith.constant 0 : index
    %2 = vector.load %arg3[%c0_0, %c0_1] : memref<256x128xf32, #tpu.memory_space<vmem>>, vector<256x128xf32>
    %c0_2 = arith.constant 0 : index
    %c0_3 = arith.constant 0 : index
    %3 = vector.load %arg4[%c0_2, %c0_3] : memref<256x128xf32, #tpu.memory_space<vmem>>, vector<256x128xf32>
    %cst = arith.constant dense<0.000000e+00> : vector<256x256xf32>
    %4 = tpu.matmul %2, %3, %cst {dimension_numbers = #tpu.dot_dimension_numbers<[1], [1], [0], [0], [0, 0, 1, 0], [], []>} : vector<256x128xf32>, vector<256x128xf32>, vector<256x256xf32> -> vector<256x256xf32>
    %5 = vector.broadcast %0 : f32 to vector<256x256xf32>
    %6 = arith.mulf %4, %5 : vector<256x256xf32>
    %c0_4 = arith.constant 0 : index
    %c0_5 = arith.constant 0 : index
    %7 = vector.load %arg5[%c0_4, %c0_5] : memref<256x256xf32, #tpu.memory_space<vmem>>, vector<256x256xf32>
    tpu.vector_store %arg5[%c0_4, %c0_5], %6 {strides = array<i32>} : memref<256x256xf32, #tpu.memory_space<vmem>>, vector<256x256xf32>,
    %8 = tpu.transpose %6, [1, 0] : vector<256x256xf32> -> vector<256x256xf32>
    %c0_6 = arith.constant 0 : index
    %c0_7 = arith.constant 0 : index
    %9 = vector.load %arg6[%c0_6, %c0_7] : memref<256x256xf32, #tpu.memory_space<vmem>>, vector<256x256xf32>
    tpu.vector_store %arg6[%c0_6, %c0_7], %8 {strides = array<i32>} : memref<256x256xf32, #tpu.memory_space<vmem>>, vector<256x256xf32>,
    %c0_i32 = arith.constant 0 : i32
    %10 = arith.cmpi eq, %arg0, %c0_i32 : i32
    %c0_i32_8 = arith.constant 0 : i32
    %11 = arith.cmpi eq, %arg1, %c0_i32_8 : i32
    %12 = arith.andi %10, %11 : i1
    %13 = arith.extui %12 : i1 to i32
    %c0_i32_9 = arith.constant 0 : i32
    %14 = arith.cmpi ne, %13, %c0_i32_9 : i32
    scf.if %14 {
      %cst_26 = arith.constant 0.000000e+00 : f32
      %c0_27 = arith.constant 0 : index
      %44 = memref.load %arg10[%c0_27] : memref<2xf32, #tpu.memory_space<smem>>
      memref.store %cst_26, %arg10[%c0_27] : memref<2xf32, #tpu.memory_space<smem>>
      %cst_28 = arith.constant 0.000000e+00 : f32
      %c1_29 = arith.constant 1 : index
      %45 = memref.load %arg10[%c1_29] : memref<2xf32, #tpu.memory_space<smem>>
      memref.store %cst_28, %arg10[%c1_29] : memref<2xf32, #tpu.memory_space<smem>>
      %cst_30 = arith.constant 0.000000e+00 : f32
      %46 = vector.broadcast %cst_30 : f32 to vector<1x256xf32>
      %c0_31 = arith.constant 0 : index
      %c0_32 = arith.constant 0 : index
      %47 = vector.load %arg9[%c0_31, %c0_32] : memref<1x256xf32, #tpu.memory_space<vmem>>, vector<1x256xf32>
      tpu.vector_store %arg9[%c0_31, %c0_32], %46 {strides = array<i32>} : memref<1x256xf32, #tpu.memory_space<vmem>>, vector<1x256xf32>,
    } else {
    }
    %c0_i32_10 = arith.constant 0 : i32
    %15 = arith.cmpi eq, %arg1, %c0_i32_10 : i32
    %16 = arith.extui %15 : i1 to i32
    %c0_i32_11 = arith.constant 0 : i32
    %17 = arith.cmpi ne, %16, %c0_i32_11 : i32
    scf.if %17 {
      %cst_26 = arith.constant 0.000000e+00 : f32
      %44 = vector.broadcast %cst_26 : f32 to vector<256x1xf32>
      %c0_27 = arith.constant 0 : index
      %c0_28 = arith.constant 0 : index
      %45 = vector.load %arg8[%c0_27, %c0_28] : memref<256x1xf32, #tpu.memory_space<vmem>>, vector<256x1xf32>
      tpu.vector_store %arg8[%c0_27, %c0_28], %44 {strides = array<i32>} : memref<256x1xf32, #tpu.memory_space<vmem>>, vector<256x1xf32>,
    } else {
    }
    %18 = vector.broadcast %1 : f32 to vector<256x256xf32>
    %19 = arith.subf %6, %18 : vector<256x256xf32>
    %20 = math.exp %19 : vector<256x256xf32>
    %c0_12 = arith.constant 0 : index
    %c0_13 = arith.constant 0 : index
    %21 = vector.load %arg8[%c0_12, %c0_13] : memref<256x1xf32, #tpu.memory_space<vmem>>, vector<256x1xf32>
    %cst_14 = arith.constant dense<0.000000e+00> : vector<256xf32>
    %22 = vector.multi_reduction <add>, %20, %cst_14 [1] : vector<256x256xf32> to vector<256xf32>
    %23 = vector.shape_cast %22 : vector<256xf32> to vector<256x1xf32>
    %24 = arith.addf %21, %23 : vector<256x1xf32>
    %c0_15 = arith.constant 0 : index
    %c0_16 = arith.constant 0 : index
    %25 = vector.load %arg8[%c0_15, %c0_16] : memref<256x1xf32, #tpu.memory_space<vmem>>, vector<256x1xf32>
    tpu.vector_store %arg8[%c0_15, %c0_16], %24 {strides = array<i32>} : memref<256x1xf32, #tpu.memory_space<vmem>>, vector<256x1xf32>,
    %26 = arith.index_cast %arg1 : i32 to index
    %c0_17 = arith.constant 0 : index
    %27 = vector.load %arg9[%26, %c0_17] : memref<1x256xf32, #tpu.memory_space<vmem>>, vector<1x256xf32>
    %cst_18 = arith.constant dense<0.000000e+00> : vector<256xf32>
    %28 = vector.multi_reduction <add>, %20, %cst_18 [0] : vector<256x256xf32> to vector<256xf32>
    %29 = vector.shape_cast %28 : vector<256xf32> to vector<1x256xf32>
    %30 = arith.addf %27, %29 : vector<1x256xf32>
    %31 = arith.index_cast %arg1 : i32 to index
    %c0_19 = arith.constant 0 : index
    %32 = vector.load %arg9[%31, %c0_19] : memref<1x256xf32, #tpu.memory_space<vmem>>, vector<1x256xf32>
    tpu.vector_store %arg9[%31, %c0_19], %30 {strides = array<i32>} : memref<1x256xf32, #tpu.memory_space<vmem>>, vector<1x256xf32>,
    %33 = arith.cmpi eq, %arg0, %arg1 : i32
    %34 = arith.extui %33 : i1 to i32
    %c0_i32_20 = arith.constant 0 : i32
    %35 = arith.cmpi ne, %34, %c0_i32_20 : i32
    scf.if %35 {
      %44 = tpu.iota {dimensions = array<i32: 0>} : vector<256x256xi32>
      %45 = tpu.iota {dimensions = array<i32: 1>} : vector<256x256xi32>
      %46 = arith.cmpi eq, %44, %45 : vector<256x256xi32>
      %c1_26 = arith.constant 1 : index
      %47 = memref.load %arg10[%c1_26] : memref<2xf32, #tpu.memory_space<smem>>
      %cst_27 = arith.constant 0.000000e+00 : f32
      %48 = vector.broadcast %cst_27 : f32 to vector<256x256xf32>
      %49 = arith.select %46, %6, %48 : vector<256x256xi1>, vector<256x256xf32>
      %50 = vector.shape_cast %49 : vector<256x256xf32> to vector<1x256x256xf32>
      %cst_28 = arith.constant dense<0.000000e+00> : vector<1xf32>
      %51 = vector.multi_reduction <add>, %50, %cst_28 [1, 2] : vector<1x256x256xf32> to vector<1xf32>
      %52 = vector.shape_cast %51 : vector<1xf32> to vector<1x1x1xf32>
      %53 = vector.extract %52[0, 0, 0] : f32 from vector<1x1x1xf32>
      %54 = arith.addf %47, %53 : f32
      %c1_29 = arith.constant 1 : index
      %55 = memref.load %arg10[%c1_29] : memref<2xf32, #tpu.memory_space<smem>>
      memref.store %54, %arg10[%c1_29] : memref<2xf32, #tpu.memory_space<smem>>
    } else {
    }
    %c0_i32_21 = arith.constant 0 : i32
    %36 = arith.cmpi eq, %arg1, %c0_i32_21 : i32
    %37 = arith.extui %36 : i1 to i32
    %c0_i32_22 = arith.constant 0 : i32
    %38 = arith.cmpi ne, %37, %c0_i32_22 : i32
    scf.if %38 {
      %c0_26 = arith.constant 0 : index
      %c0_27 = arith.constant 0 : index
      %44 = vector.load %arg8[%c0_26, %c0_27] : memref<256x1xf32, #tpu.memory_space<vmem>>, vector<256x1xf32>
      %45 = math.log %44 : vector<256x1xf32>
      %46 = vector.broadcast %1 : f32 to vector<256x1xf32>
      %47 = arith.addf %46, %45 : vector<256x1xf32>
      %c0_28 = arith.constant 0 : index
      %48 = memref.load %arg10[%c0_28] : memref<2xf32, #tpu.memory_space<smem>>
      %49 = vector.shape_cast %47 : vector<256x1xf32> to vector<1x256x1xf32>
      %cst_29 = arith.constant dense<0.000000e+00> : vector<1xf32>
      %50 = vector.multi_reduction <add>, %49, %cst_29 [1, 2] : vector<1x256x1xf32> to vector<1xf32>
      %51 = vector.shape_cast %50 : vector<1xf32> to vector<1x1x1xf32>
      %52 = vector.extract %51[0, 0, 0] : f32 from vector<1x1x1xf32>
      %53 = arith.addf %48, %52 : f32
      %c0_30 = arith.constant 0 : index
      %54 = memref.load %arg10[%c0_30] : memref<2xf32, #tpu.memory_space<smem>>
      memref.store %53, %arg10[%c0_30] : memref<2xf32, #tpu.memory_space<smem>>
    } else {
    }
    %c0_i32_23 = arith.constant 0 : i32
    %39 = arith.cmpi eq, %arg0, %c0_i32_23 : i32
    %c0_i32_24 = arith.constant 0 : i32
    %40 = arith.cmpi eq, %arg1, %c0_i32_24 : i32
    %41 = arith.andi %39, %40 : i1
    %42 = arith.extui %41 : i1 to i32
    %c0_i32_25 = arith.constant 0 : i32
    %43 = arith.cmpi ne, %42, %c0_i32_25 : i32
    scf.if %43 {
      %c0_26 = arith.constant 0 : index
      %c0_27 = arith.constant 0 : index
      %44 = vector.load %arg9[%c0_26, %c0_27] : memref<1x256xf32, #tpu.memory_space<vmem>>, vector<1x256xf32>
      %45 = math.log %44 : vector<1x256xf32>
      %46 = vector.broadcast %1 : f32 to vector<1x256xf32>
      %47 = arith.addf %46, %45 : vector<1x256xf32>
      %c0_28 = arith.constant 0 : index
      %48 = memref.load %arg10[%c0_28] : memref<2xf32, #tpu.memory_space<smem>>
      %49 = vector.shape_cast %47 : vector<1x256xf32> to vector<1x1x256xf32>
      %cst_29 = arith.constant dense<0.000000e+00> : vector<1xf32>
      %50 = vector.multi_reduction <add>, %49, %cst_29 [1, 2] : vector<1x1x256xf32> to vector<1xf32>
      %51 = vector.shape_cast %50 : vector<1xf32> to vector<1x1x1xf32>
      %52 = vector.extract %51[0, 0, 0] : f32 from vector<1x1x1xf32>
      %53 = arith.addf %48, %52 : f32
      %cst_30 = arith.constant 2.000000e+00 : f32
      %cst_31 = arith.constant 2.560000e+02 : f32
      %54 = arith.mulf %cst_30, %cst_31 : f32
      %55 = arith.divf %53, %54 : f32
      %c1_32 = arith.constant 1 : index
      %56 = memref.load %arg10[%c1_32] : memref<2xf32, #tpu.memory_space<smem>>
      %cst_33 = arith.constant 2.560000e+02 : f32
      %57 = arith.divf %56, %cst_33 : f32
      %58 = arith.subf %55, %57 : f32
      %c0_34 = arith.constant 0 : index
      %c0_35 = arith.constant 0 : index
      %59 = memref.load %arg7[%c0_34, %c0_35] : memref<1x1xf32, #tpu.memory_space<smem>>
      memref.store %58, %arg7[%c0_34, %c0_35] : memref<1x1xf32, #tpu.memory_space<smem>>
    } else {
    }
    return
  }
  func.func @transform_0(%arg0: i32, %arg1: i32) -> i32 {
    %c0_i32 = arith.constant 0 : i32
    %c0_i32_0 = arith.constant 0 : i32
    return %c0_i32 : i32
  }
  func.func @transform_1(%arg0: i32, %arg1: i32) -> (i32, i32) {
    %c0_i32 = arith.constant 0 : i32
    %c0_i32_0 = arith.constant 0 : i32
    return %arg0, %c0_i32 : i32, i32
  }
  func.func @transform_2(%arg0: i32, %arg1: i32) -> (i32, i32) {
    %c0_i32 = arith.constant 0 : i32
    %c0_i32_0 = arith.constant 0 : i32
    return %arg1, %c0_i32 : i32, i32
  }
  func.func @transform_3(%arg0: i32, %arg1: i32) -> (i32, i32) {
    %c0_i32 = arith.constant 0 : i32
    return %arg0, %arg1 : i32, i32
  }
  func.func @transform_4(%arg0: i32, %arg1: i32) -> (i32, i32) {
    %c0_i32 = arith.constant 0 : i32
    return %arg1, %arg0 : i32, i32
  }
  func.func @transform_5(%arg0: i32, %arg1: i32) -> (i32, i32) {
    %c0_i32 = arith.constant 0 : i32
    %c0_i32_0 = arith.constant 0 : i32
    %c0_i32_1 = arith.constant 0 : i32
    return %c0_i32, %c0_i32_0 : i32, i32
  }
}

</mosaic_0001>

<bundles_post_ra>
// kernel: tpu_custom_call.1
= control target key start
LH: loop header
LB: loop body
LE: loop exit
PB: predicated region body
PF: predicated region fallthrough
CT: control target
= control target key end

     0   :  { %11 = vsyncpa [#allocation8], 0  ;;  %s3252_s0 = inlined_call_operand.hbm [shape: f32[2], index: 0, kind: input, shape index: {}]   ;;  %s3253_s1 = inlined_call_operand.hbm [shape: f32[256,128], index: 1, kind: input, shape index: {}]   ;;  %s3254_s2 = inlined_call_operand.hbm [shape: f32[256,128], index: 2, kind: input, shape index: {}]   ;;  %s3255_s3 = inlined_call_operand.hbm [shape: f32[256,256], index: 3, kind: output, shape index: {0}]   ;;  %s3256_s4 = inlined_call_operand.hbm [shape: f32[256,256], index: 4, kind: output, shape index: {1}]   ;;  %s3257_s5 = inlined_call_operand.hbm [shape: f32[1,1], index: 5, kind: output, shape index: {2}]  }
   0x1   :  { %12 = vsyncpa [#allocation6], 0 }
   0x2   :  { %13 = vsyncpa [#allocation12], 0 }
   0x3   :  { %14 = vsyncpa [#allocation7], 0 }
   0x4   :  { %15 = vsyncpa [#allocation15], 0 }
   0x5   :  { %16 = vsyncpa [#allocation9], 0  ;;  %s2197_s20 = scalar_lea.hbm %s3252_s0, 16 }
   0x6   :  { %p2198_p0 = scmp.ne.s32.totalorder %s3252_s0, %s2197_s20  ;;  %p2201_p1 = scmp.lt.u32.totalorder %s2197_s20, %s3252_s0 }
   0x8   :  { %p2203_p2 = pnand %p2201_p1, %p2198_p0 }
   0xa   :  { %2206 = shalt.err (!%p2203_p2)
}
   0xb   :  { %s2317_s25 = smov [#allocation5]   ;;  %s2318_s28 = smov [#allocation10]  }
   0xc   :  { %24 = dma.hbm_to_smem %s3252_s0, 16, %s2317_s25, [#allocation8]  }
   0xd   :  { %s30_s29 = sshll.u32 %s2318_s28, 4  ;;  %s2207_s7 = scalar_lea.hbm %s3253_s1, 4096  ;;  %s31_s29 = int_to_ptr.vmem [resolvable:$true] %s30_s29 }
   0xe   :  { %p2208_p3 = scmp.ne.s32.totalorder %s3253_s1, %s2207_s7  ;;  %p2211_p4 = scmp.lt.u32.totalorder %s2207_s7, %s3253_s1 }
  0x10   :  { %p2213_p5 = pnand %p2211_p4, %p2208_p3 }
  0x12   :  { %2216 = shalt.err (!%p2213_p5)
}
  0x13   :  { %s2217_s12 = scalar_lea.vmem %s31_s29, 4096  ;;  %p2222_p7 = scmp.lt.s32.totalorder %s31_s29, %s31_s29 }
  0x14   :  { %p2218_p6 = scmp.ne.s32.totalorder %s31_s29, %s2217_s12  ;;  %p2223_p8 = scmp.lt.s32.totalorder %s2217_s12, %s2217_s12 }
  0x16   :  { %p2224_p9 = por %p2223_p8, %p2222_p7 }
  0x18   :  { %p2225_p10 = pnand %p2224_p9, %p2218_p6 }
  0x1a   :  { %2228 = shalt.err (!%p2225_p10)
}
  0x1b   :  { %s2319_s0 = smov 128   ;;  %s2320_s13 = smov 8  }
  0x1c   :  { %36 = dma.hbm_to_vmem [thread:$0]  %s3253_s1, 4096, %s31_s29, [#allocation6], %s2319_s0, %s2319_s0, %s2320_s13  }
  0x1d   :  { %s2321_s16 = smov [#allocation11]   ;;  %s2229_s20 = scalar_lea.hbm %s3254_s2, 4096 }
  0x1e   :  { %s42_s17 = sshll.u32 %s2321_s16, 4  ;;  %p2230_p11 = scmp.ne.s32.totalorder %s3254_s2, %s2229_s20  ;;  %s43_s17 = int_to_ptr.vmem [resolvable:$true] %s42_s17 }
  0x1f   :  { %p2233_p12 = scmp.lt.u32.totalorder %s2229_s20, %s3254_s2 }
  0x21   :  { %p2235_p13 = pnand %p2233_p12, %p2230_p11 }
  0x23   :  { %2238 = shalt.err (!%p2235_p13)
}
  0x24   :  { %s2239_s25 = scalar_lea.vmem %s43_s17, 4096  ;;  %p2244_p1 = scmp.lt.s32.totalorder %s43_s17, %s43_s17 }
  0x25   :  { %p2240_p0 = scmp.ne.s32.totalorder %s43_s17, %s2239_s25  ;;  %p2245_p2 = scmp.lt.s32.totalorder %s2239_s25, %s2239_s25 }
  0x27   :  { %p2246_p3 = por %p2245_p2, %p2244_p1 }
  0x29   :  { %p2247_p4 = pnand %p2246_p3, %p2240_p0 }
  0x2b   :  { %2250 = shalt.err (!%p2247_p4)
}
  0x2c   :  { %48 = dma.hbm_to_vmem [thread:$0]  %s3254_s2, 4096, %s43_s17, [#allocation12], %s2319_s0, %s2319_s0, %s2320_s13  }
  0x2d   :  { %2305 = dma.done.wait [#allocation8], 16  }
  0x2e   :  { %2306 = vsyncadd [#allocation8], 4294967280 }
  0x2f   :  { %2307 = dma.done.wait [#allocation6], 4096  }
  0x30   :  { %2308 = vsyncadd [#allocation6], 4294963200 }
  0x31   :  { %2309 = dma.done.wait [#allocation12], 4096  }
  0x32   :  { %2310 = vsyncadd [#allocation12], 4294963200 }
  0x33   :  { %58 = sfence }
  0x34   :  { %v109_v0 = vld [vmem:[#allocation11 + $0x80] sm:$0xff]  ;;  %v110_v1 = vld [vmem:[#allocation11 + $0x88] sm:$0xff]  ;;  %v111_v5 = vld [vmem:[#allocation11 + $0x90] sm:$0xff]  ;;  %s59_s2 = sld [smem:[#allocation5]]  ;;  %s1782_s27 = sld [smem:[#allocation5 + $0x1]]  ;;  %vm721_vm1 = vcmask 7168  }
  0x35   :  { %v93_v2 = vld [vmem:[#allocation11] sm:$0xff]  ;;  %v1881_v3 = vpack.c.bf16 %v110_v1, %v109_v0  ;;  %v94_v4 = vld [vmem:[#allocation11 + $0x8] sm:$0xff]  ;;  %v112_v6 = vld [vmem:[#allocation11 + $0x98] sm:$0xff]  ;;  %s2324_s28 = smov [#allocation13]  }
  0x36   :  { %v1883_v7 = vpack.c.bf16 %v94_v4, %v93_v2  ;;  %v1885_v8 = vpack.c.bf16 %v112_v6, %v111_v5  ;;  %v95_v9 = vld [vmem:[#allocation11 + $0x10] sm:$0xff]  ;;  %v96_v10 = vld [vmem:[#allocation11 + $0x18] sm:$0xff]  ;;  %v113_v11 = vld [vmem:[#allocation11 + $0xa0] sm:$0xff]  ;;  %s1739_s29 = sshll.u32 %s2324_s28, 4  ;;  %s1740_s29 = int_to_ptr.vmem [resolvable:$true] %s1739_s29 }
  0x37   :  { %1882 = vmatprep.subr.bf16.mxu0 %v1881_v3  ;;  %1913 = vmatprep.subr.bf16.mxu1 %v1881_v3  ;;  %v114_v12 = vld [vmem:[#allocation11 + $0xa8] sm:$0xff]  ;;  %v1887_v13 = vpack.c.bf16 %v96_v10, %v95_v9  ;;  %v2395_v15 = vld [vmem:[#allocation10] sm:$0xff]  ;;  %v115_v19 = vld [vmem:[#allocation11 + $0xb0] sm:$0xff]  ;;  %s2251_s30 = scalar_lea.vmem %s1740_s29, 8192  ;;  %p2256_p6 = scmp.lt.s32.totalorder %s1740_s29, %s1740_s29 }
  0x38   :  { %1884 = vmatpush3.bf16.xpose.msra.mxu0 %v1883_v7  ;;  %1921 = vmatpush3.bf16.xpose.msra.mxu1 %v1883_v7  ;;  %v1889_v14 = vpack.c.bf16 %v114_v12, %v113_v11  ;;  %v97_v16 = vld [vmem:[#allocation11 + $0x20] sm:$0xff]  ;;  %v98_v17 = vld [vmem:[#allocation11 + $0x28] sm:$0xff]  ;;  %v116_v20 = vld [vmem:[#allocation11 + $0xb8] sm:$0xff]  ;;  %p2252_p5 = scmp.ne.s32.totalorder %s1740_s29, %s2251_s30  ;;  %p2257_p7 = scmp.lt.s32.totalorder %s2251_s30, %s2251_s30 }
  0x39   :  { %1886 = vmatprep.subr.bf16.mxu0 %v1885_v8  ;;  %1914 = vmatprep.subr.bf16.mxu1 %v1885_v8  ;;  %v77_v18 = vld [vmem:[#allocation10 + $0x80] sm:$0xff]  ;;  %v1891_v21 = vpack.c.bf16 %v98_v17, %v97_v16  ;;  %v1893_v22 = vpack.c.bf16 %v116_v20, %v115_v19  ;;  %v99_v23 = vld [vmem:[#allocation11 + $0x30] sm:$0xff]  ;;  %v100_v24 = vld [vmem:[#allocation11 + $0x38] sm:$0xff]  ;;  %v3258_v16 = vlaneseq  ;;  %v3260_v19 = vmov 0.0  }
  0x3a   :  { %1817 = vmatprep.mubr.f32.mxu0 %v2395_v15  ;;  %1849 = vmatprep.mubr.f32.mxu1 %v77_v18  ;;  %v117_v25 = vld [vmem:[#allocation11 + $0xc0] sm:$0xff]  ;;  %v118_v26 = vld [vmem:[#allocation11 + $0xc8] sm:$0xff]  ;;  %v1895_v27 = vpack.c.bf16 %v100_v24, %v99_v23  ;;  %v119_v31 = vld [vmem:[#allocation11 + $0xd0] sm:$0xff]  ;;  %v2399_v17 = vstv %s59_s2  ;;  %p2258_p8 = por %p2257_p7, %p2256_p6 }
  0x3b   :  { %v1897_v28 = vpack.c.bf16 %v118_v26, %v117_v25  ;;  %v101_v29 = vld [vmem:[#allocation11 + $0x40] sm:$0xff]  ;;  %v102_v30 = vld [vmem:[#allocation11 + $0x48] sm:$0xff]  ;;  %v120_v32 = vld [vmem:[#allocation11 + $0xd8] sm:$0xff]  ;;  %vm2402_vm0 = vcmp.lt.s32.totalorder %v3258_v16, 256 }
  0x3c   :  { %v1899_v33 = vpack.c.bf16 %v102_v30, %v101_v29  ;;  %v1901_v34 = vpack.c.bf16 %v120_v32, %v119_v31  ;;  %v103_v35 = vld [vmem:[#allocation11 + $0x50] sm:$0xff]  ;;  %v104_v36 = vld [vmem:[#allocation11 + $0x58] sm:$0xff]  ;;  %v121_v37 = vld [vmem:[#allocation11 + $0xe0] sm:$0xff]  ;;  %717 = vst.msk [vmem:[#allocation3] sm:$0x3] %vm2402_vm0, %v3260_v19  ;;  %p2259_p9 = pnand %p2258_p8, %p2252_p5 }
  0x3d   :  { %v122_v38 = vld [vmem:[#allocation11 + $0xe8] sm:$0xff]  ;;  %v1903_v39 = vpack.c.bf16 %v104_v36, %v103_v35  ;;  %v105_v41 = vld [vmem:[#allocation11 + $0x60] sm:$0xff]  ;;  %v123_v43 = vld [vmem:[#allocation11 + $0xf0] sm:$0xff] }
  0x3e   :  { %v1905_v40 = vpack.c.bf16 %v122_v38, %v121_v37  ;;  %v106_v42 = vld [vmem:[#allocation11 + $0x68] sm:$0xff]  ;;  %v124_v44 = vld [vmem:[#allocation11 + $0xf8] sm:$0xff]  ;;  %v107_v47 = vld [vmem:[#allocation11 + $0x70] sm:$0xff] }
  0x3f   :  { %v1907_v45 = vpack.c.bf16 %v106_v42, %v105_v41  ;;  %v1909_v46 = vpack.c.bf16 %v124_v44, %v123_v43  ;;  %v108_v48 = vld [vmem:[#allocation11 + $0x78] sm:$0xff]  ;;  %v62_v50 = vld [vmem:[#allocation10 + $0x8] sm:$0xff]  ;;  %v63_v52 = vld [vmem:[#allocation10 + $0x10] sm:$0xff] }
  0x40   :  { %1888 = vmatpush3.bf16.xpose.msra.mxu0 %v1887_v13  ;;  %1922 = vmatpush3.bf16.xpose.msra.mxu1 %v1887_v13  ;;  %v1911_v49 = vpack.c.bf16 %v108_v48, %v107_v47  ;;  %v78_v51 = vld [vmem:[#allocation10 + $0x88] sm:$0xff]  ;;  %v79_v53 = vld [vmem:[#allocation10 + $0x90] sm:$0xff]  ;;  %v64_v54 = vld [vmem:[#allocation10 + $0x18] sm:$0xff] }
  0x41   :  { %1890 = vmatprep.subr.bf16.mxu0 %v1889_v14  ;;  %1915 = vmatprep.subr.bf16.mxu1 %v1889_v14  ;;  %v80_v55 = vld [vmem:[#allocation10 + $0x98] sm:$0xff]  ;;  %v65_v56 = vld [vmem:[#allocation10 + $0x20] sm:$0xff]  ;;  %v66_v58 = vld [vmem:[#allocation10 + $0x28] sm:$0xff] }
  0x42   :  { %v81_v57 = vld [vmem:[#allocation10 + $0xa0] sm:$0xff]  ;;  %v82_v59 = vld [vmem:[#allocation10 + $0xa8] sm:$0xff]  ;;  %v67_v60 = vld [vmem:[#allocation10 + $0x30] sm:$0xff] }
  0x43   :  { %v83_v61 = vld [vmem:[#allocation10 + $0xb0] sm:$0xff]  ;;  %v68_v62 = vld [vmem:[#allocation10 + $0x38] sm:$0xff]  ;;  %v69_v0 = vld [vmem:[#allocation10 + $0x40] sm:$0xff] }
  0x44   :  { %v84_v63 = vld [vmem:[#allocation10 + $0xb8] sm:$0xff]  ;;  %v85_v1 = vld [vmem:[#allocation10 + $0xc0] sm:$0xff]  ;;  %v70_v2 = vld [vmem:[#allocation10 + $0x48] sm:$0xff] }
  0x45   :  { %v86_v3 = vld [vmem:[#allocation10 + $0xc8] sm:$0xff]  ;;  %v71_v4 = vld [vmem:[#allocation10 + $0x50] sm:$0xff]  ;;  %v72_v6 = vld [vmem:[#allocation10 + $0x58] sm:$0xff] }
  0x46   :  { %v87_v5 = vld [vmem:[#allocation10 + $0xd0] sm:$0xff]  ;;  %v88_v7 = vld [vmem:[#allocation10 + $0xd8] sm:$0xff]  ;;  %v73_v8 = vld [vmem:[#allocation10 + $0x60] sm:$0xff] }
  0x47   :  { %v89_v9 = vld [vmem:[#allocation10 + $0xe0] sm:$0xff]  ;;  %v74_v10 = vld [vmem:[#allocation10 + $0x68] sm:$0xff]  ;;  %v75_v12 = vld [vmem:[#allocation10 + $0x70] sm:$0xff] }
  0x48   :  { %1892 = vmatpush3.bf16.xpose.msra.mxu0 %v1891_v21  ;;  %1923 = vmatpush3.bf16.xpose.msra.mxu1 %v1891_v21  ;;  %v90_v11 = vld [vmem:[#allocation10 + $0xe8] sm:$0xff]  ;;  %v91_v13 = vld [vmem:[#allocation10 + $0xf0] sm:$0xff]  ;;  %v76_v14 = vld [vmem:[#allocation10 + $0x78] sm:$0xff]  ;;  %v2409_v21 = vstv %s1782_s27 }
  0x49   :  { %1894 = vmatprep.subr.bf16.mxu0 %v1893_v22  ;;  %1916 = vmatprep.subr.bf16.mxu1 %v1893_v22 }
  0x50   :  { %1896 = vmatpush3.bf16.xpose.msra.mxu0 %v1895_v27  ;;  %1924 = vmatpush3.bf16.xpose.msra.mxu1 %v1895_v27 }
  0x51   :  { %1898 = vmatprep.subr.bf16.mxu0 %v1897_v28  ;;  %1917 = vmatprep.subr.bf16.mxu1 %v1897_v28 }
  0x58   :  { %1900 = vmatpush3.bf16.xpose.msra.mxu0 %v1899_v33  ;;  %1925 = vmatpush3.bf16.xpose.msra.mxu1 %v1899_v33 }
  0x59   :  { %1902 = vmatprep.subr.bf16.mxu0 %v1901_v34  ;;  %1918 = vmatprep.subr.bf16.mxu1 %v1901_v34 }
  0x60   :  { %1904 = vmatpush3.bf16.xpose.msra.mxu0 %v1903_v39  ;;  %1926 = vmatpush3.bf16.xpose.msra.mxu1 %v1903_v39 }
  0x61   :  { %1906 = vmatprep.subr.bf16.mxu0 %v1905_v40  ;;  %1919 = vmatprep.subr.bf16.mxu1 %v1905_v40 }
  0x68   :  { %1908 = vmatpush3.bf16.xpose.msra.mxu0 %v1907_v45  ;;  %1927 = vmatpush3.bf16.xpose.msra.mxu1 %v1907_v45 }
  0x69   :  { %1910 = vmatprep.subr.bf16.mxu0 %v1909_v46  ;;  %1920 = vmatprep.subr.bf16.mxu1 %v1909_v46 }
  0x70   :  { %1912 = vmatpush3.bf16.xpose.msra.mxu0 %v1911_v49  ;;  %1928 = vmatpush3.bf16.xpose.msra.mxu1 %v1911_v49 }
  0x77   :  { %1818 = vmatmul.mubr.f32.vlgmr.msra.gmra.mrb[0].mxu0 %v2395_v15  ;;  %1850 = vmatmul.mubr.f32.vlgmr.msra.gmra.mrb[0].mxu1 %v77_v18  ;;  %v92_v15 = vld [vmem:[#allocation10 + $0xf8] sm:$0xff] }
  0x78   :  { %1819 = vmatprep.mubr.f32.mxu0 %v62_v50  ;;  %1851 = vmatprep.mubr.f32.mxu1 %v78_v51 }
  0x7b   :  { %1820 = vmatmul.mubr.f32.gmra.mrb[2].mxu0 %v62_v50  ;;  %1852 = vmatmul.mubr.f32.gmra.mrb[2].mxu1 %v78_v51 }
  0x7c   :  { %1821 = vmatprep.mubr.f32.mxu0 %v63_v52  ;;  %1853 = vmatprep.mubr.f32.mxu1 %v79_v53 }
  0x7f   :  { %1822 = vmatmul.mubr.f32.gmra.mrb[4].mxu0 %v63_v52  ;;  %1854 = vmatmul.mubr.f32.gmra.mrb[4].mxu1 %v79_v53 }
  0x80   :  { %1823 = vmatprep.mubr.f32.mxu0 %v64_v54  ;;  %1855 = vmatprep.mubr.f32.mxu1 %v80_v55 }
  0x83   :  { %1824 = vmatmul.mubr.f32.gmra.mrb[6].mxu0 %v64_v54  ;;  %1856 = vmatmul.mubr.f32.gmra.mrb[6].mxu1 %v80_v55 }
  0x84   :  { %1825 = vmatprep.mubr.f32.mxu0 %v65_v56  ;;  %1857 = vmatprep.mubr.f32.mxu1 %v81_v57 }
  0x87   :  { %1826 = vmatmul.mubr.f32.gmra.mrb[8].mxu0 %v65_v56  ;;  %1858 = vmatmul.mubr.f32.gmra.mrb[8].mxu1 %v81_v57 }
  0x88   :  { %1827 = vmatprep.mubr.f32.mxu0 %v66_v58  ;;  %1859 = vmatprep.mubr.f32.mxu1 %v82_v59 }
  0x8b   :  { %1828 = vmatmul.mubr.f32.gmra.mrb[10].mxu0 %v66_v58  ;;  %1860 = vmatmul.mubr.f32.gmra.mrb[10].mxu1 %v82_v59 }
  0x8c   :  { %1829 = vmatprep.mubr.f32.mxu0 %v67_v60  ;;  %1861 = vmatprep.mubr.f32.mxu1 %v83_v61 }
  0x8f   :  { %1830 = vmatmul.mubr.f32.gmra.mrb[12].mxu0 %v67_v60  ;;  %1862 = vmatmul.mubr.f32.gmra.mrb[12].mxu1 %v83_v61 }
  0x90   :  { %1831 = vmatprep.mubr.f32.mxu0 %v68_v62  ;;  %1863 = vmatprep.mubr.f32.mxu1 %v84_v63 }
  0x93   :  { %1832 = vmatmul.mubr.f32.gmra.mrb[14].mxu0 %v68_v62  ;;  %1864 = vmatmul.mubr.f32.gmra.mrb[14].mxu1 %v84_v63 }
  0x94   :  { %1833 = vmatprep.mubr.f32.mxu0 %v69_v0  ;;  %1865 = vmatprep.mubr.f32.mxu1 %v85_v1 }
  0x97   :  { %1834 = vmatmul.mubr.f32.gmra.mrb[16].mxu0 %v69_v0  ;;  %1866 = vmatmul.mubr.f32.gmra.mrb[16].mxu1 %v85_v1 }
  0x98   :  { %1835 = vmatprep.mubr.f32.mxu0 %v70_v2  ;;  %1867 = vmatprep.mubr.f32.mxu1 %v86_v3 }
  0x9b   :  { %1836 = vmatmul.mubr.f32.gmra.mrb[18].mxu0 %v70_v2  ;;  %1868 = vmatmul.mubr.f32.gmra.mrb[18].mxu1 %v86_v3 }
  0x9c   :  { %1837 = vmatprep.mubr.f32.mxu0 %v71_v4  ;;  %1869 = vmatprep.mubr.f32.mxu1 %v87_v5 }
  0x9f   :  { %1838 = vmatmul.mubr.f32.gmra.mrb[20].mxu0 %v71_v4  ;;  %1870 = vmatmul.mubr.f32.gmra.mrb[20].mxu1 %v87_v5 }
  0xa0   :  { %1839 = vmatprep.mubr.f32.mxu0 %v72_v6  ;;  %1871 = vmatprep.mubr.f32.mxu1 %v88_v7 }
  0xa3   :  { %1840 = vmatmul.mubr.f32.gmra.mrb[22].mxu0 %v72_v6  ;;  %1872 = vmatmul.mubr.f32.gmra.mrb[22].mxu1 %v88_v7 }
  0xa4   :  { %1841 = vmatprep.mubr.f32.mxu0 %v73_v8  ;;  %1873 = vmatprep.mubr.f32.mxu1 %v89_v9 }
  0xa7   :  { %1842 = vmatmul.mubr.f32.gmra.mrb[24].mxu0 %v73_v8  ;;  %1874 = vmatmul.mubr.f32.gmra.mrb[24].mxu1 %v89_v9 }
  0xa8   :  { %1843 = vmatprep.mubr.f32.mxu0 %v74_v10  ;;  %1875 = vmatprep.mubr.f32.mxu1 %v90_v11 }
  0xab   :  { %1844 = vmatmul.mubr.f32.gmra.mrb[26].mxu0 %v74_v10  ;;  %1876 = vmatmul.mubr.f32.gmra.mrb[26].mxu1 %v90_v11 }
  0xac   :  { %1845 = vmatprep.mubr.f32.mxu0 %v75_v12  ;;  %1877 = vmatprep.mubr.f32.mxu1 %v91_v13 }
  0xaf   :  { %1846 = vmatmul.mubr.f32.gmra.mrb[28].mxu0 %v75_v12  ;;  %1878 = vmatmul.mubr.f32.gmra.mrb[28].mxu1 %v91_v13 }
  0xb0   :  { %1847 = vmatprep.mubr.f32.mxu0 %v76_v14  ;;  %1879 = vmatprep.mubr.f32.mxu1 %v92_v15 }
  0xb3   :  { %1848 = vmatmul.mubr.f32.gmra.mrb[30].mxu0 %v76_v14  ;;  %1880 = vmatmul.mubr.f32.gmra.mrb[30].mxu1 %v92_v15 }
 0x14a   :  { %v191_v20 = vpop.f32.mrb[0].mxu0  ;;  %v287_v22 = vpop.f32.mrb[0].mxu1 }
 0x14b   :  { %v383_v23 = vmul.f32 %v2399_v17, %v191_v20  ;;  %v193_v24 = vpop.f32.mrb[1].mxu0  ;;  %v2413_v25 = vmul.f32 %v2399_v17, %v287_v22  ;;  %v289_v26 = vpop.f32.mrb[1].mxu1 }
 0x14c   :  { %v384_v27 = vmul.f32 %v2399_v17, %v193_v24  ;;  %v2417_v28 = vmul.f32 %v2399_v17, %v289_v26 }
 0x14d   :  { %447 = vst [vmem:[#allocation13] sm:$0xff] %v383_v23  ;;  %v755_v29 = vsub.f32 %v383_v23, %v2409_v21  ;;  %479 = vst [vmem:[#allocation13 + $0x100] sm:$0xff] %v2413_v25 }
 0x14e   :  { %448 = vst [vmem:[#allocation13 + $0x8] sm:$0xff] %v384_v27  ;;  %v756_v30 = vsub.f32 %v384_v27, %v2409_v21  ;;  %v197_v31 = vpop.f32.mrb[2].mxu0  ;;  %480 = vst [vmem:[#allocation13 + $0x108] sm:$0xff] %v2417_v28  ;;  %v293_v32 = vpop.f32.mrb[2].mxu1 }
 0x14f   :  { %v819_v33 = vmul.f32 1.442695, %v755_v29  ;;  %v385_v34 = vmul.f32 %v2399_v17, %v197_v31  ;;  %v199_v35 = vpop.f32.mrb[3].mxu0  ;;  %v2425_v36 = vmul.f32 %v2399_v17, %v293_v32  ;;  %v295_v37 = vpop.f32.mrb[3].mxu1 }
 0x150   :  { %v821_v38 = vmul.f32 1.442695, %v756_v30  ;;  %v386_v39 = vmul.f32 %v2399_v17, %v199_v35  ;;  %v2429_v40 = vmul.f32 %v2399_v17, %v295_v37  ;;  %v788_v35 = vsub.f32 %v2417_v28, %v2409_v21 }
 0x151   :  { %1947 = vpow2.f32 %v819_v33  ;;  %449 = vst [vmem:[#allocation13 + $0x10] sm:$0xff] %v385_v34  ;;  %v757_v41 = vsub.f32 %v385_v34, %v2409_v21  ;;  %481 = vst [vmem:[#allocation13 + $0x110] sm:$0xff] %v2425_v36  ;;  %v787_v33 = vsub.f32 %v2413_v25, %v2409_v21 }
 0x152   :  { %1949 = vpow2.f32 %v821_v38  ;;  %450 = vst [vmem:[#allocation13 + $0x18] sm:$0xff] %v386_v39  ;;  %v758_v42 = vsub.f32 %v386_v39, %v2409_v21  ;;  %v203_v43 = vpop.f32.mrb[4].mxu0  ;;  %482 = vst [vmem:[#allocation13 + $0x118] sm:$0xff] %v2429_v40  ;;  %v299_v44 = vpop.f32.mrb[4].mxu1 }
 0x153   :  { %v823_v45 = vmul.f32 1.442695, %v757_v41  ;;  %v387_v46 = vmul.f32 %v2399_v17, %v203_v43  ;;  %v205_v47 = vpop.f32.mrb[5].mxu0  ;;  %v301_v48 = vpop.f32.mrb[5].mxu1  ;;  %v2440_v54 = vmul.f32 %v2399_v17, %v299_v44 }
 0x154   :  { %v825_v49 = vmul.f32 1.442695, %v758_v42  ;;  %v388_v50 = vmul.f32 %v2399_v17, %v205_v47  ;;  %v2444_v59 = vmul.f32 %v2399_v17, %v301_v48  ;;  %v883_v48 = vmul.f32 1.442695, %v787_v33 }
 0x155   :  { %1951 = vpow2.f32 %v823_v45  ;;  %451 = vst [vmem:[#allocation13 + $0x20] sm:$0xff] %v387_v46  ;;  %v759_v51 = vsub.f32 %v387_v46, %v2409_v21  ;;  %483 = vst [vmem:[#allocation13 + $0x120] sm:$0xff] %v2440_v54 }
 0x156   :  { %1953 = vpow2.f32 %v825_v49  ;;  %452 = vst [vmem:[#allocation13 + $0x28] sm:$0xff] %v388_v50  ;;  %v760_v52 = vsub.f32 %v388_v50, %v2409_v21  ;;  %v209_v53 = vpop.f32.mrb[6].mxu0  ;;  %v305_v55 = vpop.f32.mrb[6].mxu1  ;;  %484 = vst [vmem:[#allocation13 + $0x128] sm:$0xff] %v2444_v59  ;;  %v885_v50 = vmul.f32 1.442695, %v788_v35 }
 0x157   :  { %v827_v56 = vmul.f32 1.442695, %v759_v51  ;;  %v389_v57 = vmul.f32 %v2399_v17, %v209_v53  ;;  %v211_v58 = vpop.f32.mrb[7].mxu0  ;;  %v307_v60 = vpop.f32.mrb[7].mxu1  ;;  %v2460_v10 = vmul.f32 %v2399_v17, %v305_v55  ;;  %v789_v51 = vsub.f32 %v2425_v36, %v2409_v21 }
 0x158   :  { %v829_v61 = vmul.f32 1.442695, %v760_v52  ;;  %v390_v62 = vmul.f32 %v2399_v17, %v211_v58  ;;  %v2475_v27 = vmul.f32 %v2399_v17, %v307_v60  ;;  %v791_v36 = vsub.f32 %v2440_v54, %v2409_v21 }
 0x159   :  { %1955 = vpow2.f32 %v827_v56  ;;  %453 = vst [vmem:[#allocation13 + $0x30] sm:$0xff] %v389_v57  ;;  %v761_v63 = vsub.f32 %v389_v57, %v2409_v21  ;;  %485 = vst [vmem:[#allocation13 + $0x130] sm:$0xff] %v2460_v10  ;;  %v790_v56 = vsub.f32 %v2429_v40, %v2409_v21  ;;  %v793_v33 = vsub.f32 %v2460_v10, %v2409_v21 }
 0x15a   :  { %1957 = vpow2.f32 %v829_v61  ;;  %454 = vst [vmem:[#allocation13 + $0x38] sm:$0xff] %v390_v62  ;;  %v762_v0 = vsub.f32 %v390_v62, %v2409_v21  ;;  %v215_v1 = vpop.f32.mrb[8].mxu0  ;;  %v2451_v2 = vpop.f32.mrb[8].mxu1  ;;  %486 = vst [vmem:[#allocation13 + $0x138] sm:$0xff] %v2475_v27 }
 0x15b   :  { %v2453_v3 = vpop.eup %1947  ;;  %v831_v4 = vmul.f32 1.442695, %v761_v63  ;;  %v391_v5 = vmul.f32 %v2399_v17, %v215_v1  ;;  %v217_v6 = vpop.f32.mrb[9].mxu0  ;;  %v2518_v63 = vmul.f32 %v2399_v17, %v2451_v2  ;;  %v887_v2 = vmul.f32 1.442695, %v789_v51 }
 0x15c   :  { %v2456_v7 = vpop.eup %1949  ;;  %v833_v8 = vmul.f32 1.442695, %v762_v0  ;;  %v392_v9 = vmul.f32 %v2399_v17, %v217_v6  ;;  %v2462_v11 = vpop.f32.mrb[9].mxu1 }
 0x15d   :  { %1959 = vpow2.f32 %v831_v4  ;;  %455 = vst [vmem:[#allocation13 + $0x40] sm:$0xff] %v391_v5  ;;  %v763_v12 = vsub.f32 %v391_v5, %v2409_v21  ;;  %v979_v13 = vadd.f32 %v2456_v7, %v2453_v3  ;;  %v792_v5 = vsub.f32 %v2444_v59, %v2409_v21  ;;  %487 = vst [vmem:[#allocation13 + $0x140] sm:$0xff] %v2518_v63 }
 0x15e   :  { %1961 = vpow2.f32 %v833_v8  ;;  %456 = vst [vmem:[#allocation13 + $0x48] sm:$0xff] %v392_v9  ;;  %v764_v14 = vsub.f32 %v392_v9, %v2409_v21  ;;  %v221_v15 = vpop.f32.mrb[10].mxu0  ;;  %v2469_v20 = vpop.f32.mrb[10].mxu1  ;;  %v2529_v6 = vmul.f32 %v2399_v17, %v2462_v11 }
 0x15f   :  { %v2471_v22 = vpop.eup %1951  ;;  %v835_v23 = vmul.f32 1.442695, %v763_v12  ;;  %v393_v24 = vmul.f32 %v2399_v17, %v221_v15  ;;  %v223_v26 = vpop.f32.mrb[11].mxu0  ;;  %980 = vadd.xlane.f32.xlu0 %v979_v13  ;;  %v889_v12 = vmul.f32 1.442695, %v790_v56 }
 0x160   :  { %v2477_v29 = vpop.f32.mrb[11].mxu1  ;;  %v2479_v30 = vpop.eup %1953  ;;  %v837_v31 = vmul.f32 1.442695, %v764_v14  ;;  %v394_v32 = vmul.f32 %v2399_v17, %v223_v26  ;;  %488 = vst [vmem:[#allocation13 + $0x148] sm:$0xff] %v2529_v6  ;;  %v1143_v51 = vadd.f32 %v2471_v22, %v2453_v3 }
 0x161   :  { %1963 = vpow2.f32 %v835_v23  ;;  %457 = vst [vmem:[#allocation13 + $0x50] sm:$0xff] %v393_v24  ;;  %v765_v34 = vsub.f32 %v393_v24, %v2409_v21  ;;  %v982_v39 = vadd.f32 %v2479_v30, %v2471_v22  ;;  %v891_v23 = vmul.f32 1.442695, %v791_v36 }
 0x162   :  { %1965 = vpow2.f32 %v837_v31  ;;  %458 = vst [vmem:[#allocation13 + $0x58] sm:$0xff] %v394_v32  ;;  %v766_v37 = vsub.f32 %v394_v32, %v2409_v21  ;;  %v227_v38 = vpop.f32.mrb[12].mxu0  ;;  %v2491_v41 = vpop.f32.mrb[12].mxu1  ;;  %v893_v32 = vmul.f32 1.442695, %v792_v5  ;;  %v794_v22 = vsub.f32 %v2475_v27, %v2409_v21 }
 0x163   :  { %v2493_v25 = vpop.eup %1955  ;;  %v839_v42 = vmul.f32 1.442695, %v765_v34  ;;  %v395_v43 = vmul.f32 %v2399_v17, %v227_v38  ;;  %v229_v44 = vpop.f32.mrb[13].mxu0  ;;  %983 = vadd.xlane.f32.xlu0 %v982_v39 }
 0x164   :  { %v2496_v45 = vpop.f32.mrb[13].mxu1  ;;  %v2498_v28 = vpop.eup %1957  ;;  %v841_v46 = vmul.f32 1.442695, %v766_v37  ;;  %v396_v47 = vmul.f32 %v2399_v17, %v229_v44 }
 0x165   :  { %1967 = vpow2.f32 %v839_v42  ;;  %459 = vst [vmem:[#allocation13 + $0x60] sm:$0xff] %v395_v43  ;;  %v767_v49 = vsub.f32 %v395_v43, %v2409_v21  ;;  %v985_v55 = vadd.f32 %v2498_v28, %v2493_v25 }
 0x166   :  { %1969 = vpow2.f32 %v841_v46  ;;  %460 = vst [vmem:[#allocation13 + $0x68] sm:$0xff] %v396_v47  ;;  %v768_v52 = vsub.f32 %v396_v47, %v2409_v21  ;;  %v233_v53 = vpop.f32.mrb[14].mxu0  ;;  %v2509_v57 = vpop.f32.mrb[14].mxu1 }
 0x167   :  { %v2511_v58 = vpop.eup %1959  ;;  %v843_v60 = vmul.f32 1.442695, %v767_v49  ;;  %v397_v61 = vmul.f32 %v2399_v17, %v233_v53  ;;  %v235_v62 = vpop.f32.mrb[15].mxu0  ;;  %986 = vadd.xlane.f32.xlu1 %v985_v55  ;;  %v895_v49 = vmul.f32 1.442695, %v793_v33  ;;  %v2612_v33 = vmul.f32 %v2399_v17, %v2477_v29 }
 0x168   :  { %v2520_v0 = vpop.f32.mrb[15].mxu1  ;;  %v2522_v1 = vpop.eup %1961  ;;  %v845_v40 = vmul.f32 1.442695, %v768_v52  ;;  %v398_v4 = vmul.f32 %v2399_v17, %v235_v62  ;;  %v1180_v52 = vadd.f32 %v2479_v30, %v2456_v7 }
 0x169   :  { %1971 = vpow2.f32 %v843_v60  ;;  %461 = vst [vmem:[#allocation13 + $0x70] sm:$0xff] %v397_v61  ;;  %v769_v54 = vsub.f32 %v397_v61, %v2409_v21  ;;  %v988_v59 = vadd.f32 %v2522_v1, %v2511_v58  ;;  %490 = vst [vmem:[#allocation13 + $0x158] sm:$0xff] %v2612_v33 }
 0x16a   :  { %1973 = vpow2.f32 %v845_v40  ;;  %462 = vst [vmem:[#allocation13 + $0x78] sm:$0xff] %v398_v4  ;;  %v770_v8 = vsub.f32 %v398_v4, %v2409_v21  ;;  %v239_v9 = vpop.f32.mrb[16].mxu0  ;;  %v2537_v11 = vpop.f32.mrb[16].mxu1  ;;  %v2582_v40 = vmul.f32 %v2399_v17, %v2469_v20  ;;  %v795_v20 = vsub.f32 %v2518_v63, %v2409_v21 }
 0x16b   :  { %v2539_v13 = vpop.eup %1963  ;;  %1975 = vpow2.f32 %v883_v48  ;;  %v399_v14 = vmul.f32 %v2399_v17, %v239_v9  ;;  %v241_v15 = vpop.f32.mrb[17].mxu0  ;;  %989 = vadd.xlane.f32.xlu1 %v988_v59  ;;  %v847_v34 = vmul.f32 1.442695, %v769_v54  ;;  %v1181_v9 = vadd.f32 %v2498_v28, %v1180_v52 }
 0x16c   :  { %v2542_v24 = vpop.f32.mrb[17].mxu1  ;;  %v2544_v26 = vpop.eup %1965  ;;  %1977 = vpow2.f32 %v885_v50  ;;  %v400_v31 = vmul.f32 %v2399_v17, %v241_v15  ;;  %v849_v35 = vmul.f32 1.442695, %v770_v8  ;;  %v1144_v8 = vadd.f32 %v2493_v25, %v1143_v51  ;;  %489 = vst [vmem:[#allocation13 + $0x150] sm:$0xff] %v2582_v40 }
 0x16d   :  { %1979 = vpow2.f32 %v887_v2  ;;  %463 = vst [vmem:[#allocation13 + $0x80] sm:$0xff] %v399_v14  ;;  %v771_v37 = vsub.f32 %v399_v14, %v2409_v21  ;;  %v991_v39 = vadd.f32 %v2544_v26, %v2539_v13  ;;  %v796_v15 = vsub.f32 %v2529_v6, %v2409_v21 }
 0x16e   :  { %1981 = vpow2.f32 %v889_v12  ;;  %464 = vst [vmem:[#allocation13 + $0x88] sm:$0xff] %v400_v31  ;;  %v245_v38 = vpop.f32.mrb[18].mxu0  ;;  %v2552_v42 = vpop.f32.mrb[18].mxu1  ;;  %v772_v44 = vsub.f32 %v400_v31, %v2409_v21  ;;  %v897_v63 = vmul.f32 1.442695, %v794_v22  ;;  %v1182_v29 = vadd.f32 %v2522_v1, %v1181_v9 }
 0x16f   :  { %v2554_v43 = vpop.eup %1967  ;;  %1983 = vpow2.f32 %v891_v23  ;;  %v401_v10 = vmul.f32 %v2399_v17, %v245_v38  ;;  %v247_v46 = vpop.f32.mrb[19].mxu0  ;;  %992 = vadd.xlane.f32.xlu0 %v991_v39  ;;  %v851_v55 = vmul.f32 1.442695, %v771_v37  ;;  %v2624_v39 = vmul.f32 %v2399_v17, %v2491_v41 }
 0x170   :  { %v2558_v47 = vpop.eup %1969  ;;  %1985 = vpow2.f32 %v893_v32  ;;  %v402_v48 = vmul.f32 %v2399_v17, %v247_v46  ;;  %v2561_v50 = vpop.f32.mrb[19].mxu1  ;;  %v853_v3 = vmul.f32 1.442695, %v772_v44  ;;  %v899_v46 = vmul.f32 1.442695, %v795_v20 }
 0x171   :  { %1987 = vpow2.f32 %v847_v34  ;;  %465 = vst [vmem:[#allocation13 + $0x90] sm:$0xff] %v401_v10  ;;  %v773_v53 = vsub.f32 %v401_v10, %v2409_v21  ;;  %v994_v61 = vadd.f32 %v2558_v47, %v2554_v43  ;;  %491 = vst [vmem:[#allocation13 + $0x160] sm:$0xff] %v2624_v39 }
 0x172   :  { %1989 = vpow2.f32 %v849_v35  ;;  %466 = vst [vmem:[#allocation13 + $0x98] sm:$0xff] %v402_v48  ;;  %v774_v56 = vsub.f32 %v402_v48, %v2409_v21  ;;  %v251_v60 = vpop.f32.mrb[20].mxu0  ;;  %v2571_v62 = vpop.f32.mrb[20].mxu1  ;;  %v1145_v35 = vadd.f32 %v2511_v58, %v1144_v8  ;;  %v797_v8 = vsub.f32 %v2582_v40, %v2409_v21 }
 0x173   :  { %v2573_v36 = vpop.eup %1971  ;;  %v2576_v7 = vmul.f32 %v2399_v17, %v251_v60  ;;  %v253_v30 = vpop.f32.mrb[21].mxu0  ;;  %1991 = vpow2.f32 %v895_v49  ;;  %995 = vadd.xlane.f32.xlu1 %v994_v61  ;;  %v855_v27 = vmul.f32 1.442695, %v773_v53  ;;  %v901_v49 = vmul.f32 1.442695, %v796_v15 }
 0x174   :  { %v2584_v4 = vpop.f32.mrb[21].mxu1  ;;  %v2586_v5 = vpop.eup %1973  ;;  %v404_v54 = vmul.f32 %v2399_v17, %v253_v30  ;;  %1993 = vpow2.f32 %v851_v55  ;;  %v857_v59 = vmul.f32 1.442695, %v774_v56  ;;  %v1146_v48 = vadd.f32 %v2539_v13, %v1145_v35 }
 0x175   :  { %v2589_v2 = vpop.eup %1975  ;;  %467 = vst [vmem:[#allocation13 + $0xa0] sm:$0xff] %v2576_v7  ;;  %v997_v25 = vadd.f32 %v2586_v5, %v2573_v36  ;;  %1995 = vpow2.f32 %v853_v3  ;;  %v775_v37 = vsub.f32 %v2576_v7, %v2409_v21  ;;  %v1183_v61 = vadd.f32 %v2544_v26, %v1182_v29 }
 0x176   :  { %v2597_v12 = vpop.eup %1977  ;;  %468 = vst [vmem:[#allocation13 + $0xa8] sm:$0xff] %v404_v54  ;;  %v257_v14 = vpop.f32.mrb[22].mxu0  ;;  %1997 = vpow2.f32 %v855_v27  ;;  %v776_v10 = vsub.f32 %v404_v54, %v2409_v21  ;;  %v1147_v3 = vadd.f32 %v2554_v43, %v1146_v48 }
 0x177   :  { %v2603_v28 = vpop.f32.mrb[22].mxu1  ;;  %v2605_v23 = vpop.eup %1979  ;;  %v2608_v31 = vmul.f32 %v2399_v17, %v257_v14  ;;  %998 = vadd.xlane.f32.xlu0 %v997_v25  ;;  %1999 = vpow2.f32 %v857_v59  ;;  %v859_v22 = vmul.f32 1.442695, %v775_v37  ;;  %v1184_v27 = vadd.f32 %v2558_v47, %v1183_v61 }
 0x178   :  { %v259_v32 = vpop.f32.mrb[23].mxu0  ;;  %v2614_v34 = vpop.f32.mrb[23].mxu1  ;;  %2001 = vpow2.f32 %v897_v63  ;;  %v861_v54 = vmul.f32 1.442695, %v776_v10  ;;  %v1148_v20 = vadd.f32 %v2573_v36, %v1147_v3  ;;  %v428_v37 = vmul.f32 %v2399_v17, %v2496_v45 }
 0x179   :  { %v2616_v6 = vpop.eup %1981  ;;  %v406_v38 = vmul.f32 %v2399_v17, %v259_v32  ;;  %469 = vst [vmem:[#allocation13 + $0xb0] sm:$0xff] %v2608_v31  ;;  %v777_v41 = vsub.f32 %v2608_v31, %v2409_v21  ;;  %2003 = vpow2.f32 %v899_v46  ;;  %v1185_v36 = vadd.f32 %v2586_v5, %v1184_v27 }
 0x17a   :  { %v2626_v44 = vpop.eup %1983  ;;  %v263_v51 = vpop.f32.mrb[24].mxu0  ;;  %2005 = vpow2.f32 %v901_v49  ;;  %v903_v10 = vmul.f32 1.442695, %v797_v8  ;;  %v798_v5 = vsub.f32 %v2612_v33, %v2409_v21  ;;  %492 = vst [vmem:[#allocation13 + $0x168] sm:$0xff] %v428_v37 }
 0x17b   :  { %v2632_v58 = vpop.eup %1985  ;;  %470 = vst [vmem:[#allocation13 + $0xb8] sm:$0xff] %v406_v38  ;;  %v2638_v1 = vpop.f32.mrb[24].mxu1  ;;  %v778_v53 = vsub.f32 %v406_v38, %v2409_v21  ;;  %v2642_v55 = vmul.f32 %v2399_v17, %v263_v51  ;;  %v863_v26 = vmul.f32 1.442695, %v777_v41  ;;  %2007 = vpow2.f32 %v859_v22 }
 0x17c   :  { %v1988_v52 = vpop.eup %1987  ;;  %v265_v56 = vpop.f32.mrb[25].mxu0  ;;  %2009 = vpow2.f32 %v861_v54  ;;  %v799_v22 = vsub.f32 %v2624_v39, %v2409_v21  ;;  %v2689_v54 = vmul.f32 %v2399_v17, %v2509_v57  ;;  %v800_v39 = vsub.f32 %v428_v37, %v2409_v21 }
 0x17d   :  { %v2644_v13 = vpop.f32.mrb[25].mxu1  ;;  %v1990_v60 = vpop.eup %1989  ;;  %v2649_v30 = vmul.f32 %v2399_v17, %v265_v56  ;;  %471 = vst [vmem:[#allocation13 + $0xc0] sm:$0xff] %v2642_v55  ;;  %v865_v14 = vmul.f32 1.442695, %v778_v53  ;;  %v779_v15 = vsub.f32 %v2642_v55, %v2409_v21  ;;  %v1149_v29 = vadd.f32 %v1988_v52, %v1148_v20 }
 0x17e   :  { %v2654_v9 = vpop.eup %1991  ;;  %v269_v43 = vpop.f32.mrb[26].mxu0  ;;  %v1000_v40 = vadd.f32 %v1990_v60, %v1988_v52  ;;  %v1186_v48 = vadd.f32 %v1990_v60, %v1185_v36  ;;  %2011 = vpow2.f32 %v863_v26  ;;  %493 = vst [vmem:[#allocation13 + $0x170] sm:$0xff] %v2689_v54  ;;  %v2703_v57 = vmul.f32 %v2399_v17, %v2520_v0 }
 0x17f   :  { %472 = vst [vmem:[#allocation13 + $0xc8] sm:$0xff] %v2649_v30  ;;  %v2659_v59 = vpop.f32.mrb[26].mxu1  ;;  %v2664_v25 = vmul.f32 %v2399_v17, %v269_v43  ;;  %v271_v63 = vpop.f32.mrb[27].mxu0  ;;  %v780_v35 = vsub.f32 %v2649_v30, %v2409_v21  ;;  %2013 = vpow2.f32 %v865_v14  ;;  %v867_v52 = vmul.f32 1.442695, %v779_v15 }
 0x180   :  { %v2666_v32 = vpop.f32.mrb[27].mxu1  ;;  %v1994_v47 = vpop.eup %1993  ;;  %1001 = vadd.xlane.f32.xlu1 %v1000_v40  ;;  %v2681_v53 = vmul.f32 %v2399_v17, %v271_v63  ;;  %2015 = vpow2.f32 %v903_v10  ;;  %v905_v43 = vmul.f32 1.442695, %v798_v5  ;;  %v907_v10 = vmul.f32 1.442695, %v799_v22  ;;  %494 = vst [vmem:[#allocation13 + $0x178] sm:$0xff] %v2703_v57 }
 0x181   :  { %v1996_v38 = vpop.eup %1995  ;;  %473 = vst [vmem:[#allocation13 + $0xd0] sm:$0xff] %v2664_v25  ;;  %v781_v46 = vsub.f32 %v2664_v25, %v2409_v21  ;;  %v1150_v51 = vadd.f32 %v1994_v47, %v1149_v29  ;;  %v869_v60 = vmul.f32 1.442695, %v780_v35  ;;  %2017 = vpow2.f32 %v867_v52 }
 0x182   :  { %v275_v41 = vpop.f32.mrb[28].mxu0  ;;  %v2678_v49 = vpop.f32.mrb[28].mxu1  ;;  %v1003_v33 = vadd.f32 %v1996_v38, %v1994_v47  ;;  %474 = vst [vmem:[#allocation13 + $0xd8] sm:$0xff] %v2681_v53  ;;  %v782_v20 = vsub.f32 %v2681_v53, %v2409_v21 }
 0x183   :  { %v1998_v45 = vpop.eup %1997  ;;  %v277_v56 = vpop.f32.mrb[29].mxu0  ;;  %v871_v27 = vmul.f32 1.442695, %v781_v46  ;;  %v2697_v26 = vmul.f32 %v2399_v17, %v275_v41  ;;  %2019 = vpow2.f32 %v869_v60  ;;  %v1187_v46 = vadd.f32 %v1996_v38, %v1186_v48 }
 0x184   :  { %v2683_v61 = vpop.f32.mrb[29].mxu1  ;;  %v2000_v3 = vpop.eup %1999  ;;  %1004 = vadd.xlane.f32.xlu0 %v1003_v33  ;;  %v2706_v14 = vmul.f32 %v2399_v17, %v277_v56  ;;  %v873_v47 = vmul.f32 1.442695, %v782_v20  ;;  %v1151_v5 = vadd.f32 %v1998_v45, %v1150_v51  ;;  %v909_v56 = vmul.f32 1.442695, %v800_v39 }
 0x185   :  { %v2691_v8 = vpop.eup %2001  ;;  %475 = vst [vmem:[#allocation13 + $0xe0] sm:$0xff] %v2697_v26  ;;  %v783_v36 = vsub.f32 %v2697_v26, %v2409_v21  ;;  %v1006_v35 = vadd.f32 %v2000_v3, %v1998_v45  ;;  %2021 = vpow2.f32 %v871_v27  ;;  %v431_v20 = vmul.f32 %v2399_v17, %v2537_v11 }
 0x186   :  { %v281_v15 = vpop.f32.mrb[30].mxu0  ;;  %v2708_v40 = vpop.f32.mrb[30].mxu1  ;;  %476 = vst [vmem:[#allocation13 + $0xe8] sm:$0xff] %v2706_v14  ;;  %2023 = vpow2.f32 %v905_v43  ;;  %v784_v33 = vsub.f32 %v2706_v14, %v2409_v21  ;;  %v2730_v38 = vmul.f32 %v2399_v17, %v2542_v24  ;;  %v1188_v51 = vadd.f32 %v2000_v3, %v1187_v46 }
 0x187   :  { %v2710_v63 = vpop.eup %2003  ;;  %v283_v37 = vpop.f32.mrb[31].mxu0  ;;  %v875_v41 = vmul.f32 1.442695, %v783_v36  ;;  %1007 = vadd.xlane.f32.xlu1 %v1006_v35  ;;  %2025 = vpow2.f32 %v873_v47  ;;  %v2726_v22 = vmul.f32 %v2399_v17, %v281_v15  ;;  %v801_v27 = vsub.f32 %v2689_v54, %v2409_v21  ;;  %495 = vst [vmem:[#allocation13 + $0x180] sm:$0xff] %v431_v20 }
 0x188   :  { %v2715_v29 = vpop.f32.mrb[31].mxu1  ;;  %v2717_v0 = vpop.eup %2005  ;;  %v2733_v48 = vmul.f32 %v2399_v17, %v283_v37  ;;  %2027 = vpow2.f32 %v907_v10  ;;  %v877_v43 = vmul.f32 1.442695, %v784_v33  ;;  %496 = vst [vmem:[#allocation13 + $0x188] sm:$0xff] %v2730_v38  ;;  %v802_v3 = vsub.f32 %v2703_v57, %v2409_v21 }
 0x189   :  { %v2008_v52 = vpop.eup %2007  ;;  %2029 = vpow2.f32 %v875_v41  ;;  %477 = vst [vmem:[#allocation13 + $0xf0] sm:$0xff] %v2726_v22  ;;  %v785_v39 = vsub.f32 %v2726_v22, %v2409_v21  ;;  %v911_v37 = vmul.f32 1.442695, %v801_v27  ;;  %v803_v10 = vsub.f32 %v431_v20, %v2409_v21 }
 0x18a   :  { %v2010_v60 = vpop.eup %2009  ;;  %478 = vst [vmem:[#allocation13 + $0xf8] sm:$0xff] %v2733_v48  ;;  %v1152_v24 = vadd.f32 %v2008_v52, %v1151_v5  ;;  %2031 = vpow2.f32 %v877_v43  ;;  %v786_v36 = vsub.f32 %v2733_v48, %v2409_v21  ;;  %v804_v46 = vsub.f32 %v2730_v38, %v2409_v21 }
 0x18b   :  { %v2012_v45 = vpop.eup %2011  ;;  %v1189_v15 = vadd.f32 %v2010_v60, %v1188_v51  ;;  %2033 = vpow2.f32 %v909_v56  ;;  %v879_v47 = vmul.f32 1.442695, %v785_v39  ;;  %v1009_v35 = vadd.f32 %v2010_v60, %v2008_v52 }
 0x18c   :  { %v2014_v11 = vpop.eup %2013  ;;  %v433_v5 = vmul.f32 %v2399_v17, %v2552_v42  ;;  %v881_v33 = vmul.f32 1.442695, %v786_v36  ;;  %v2755_v56 = vmul.f32 %v2399_v17, %v2561_v50  ;;  %v1153_v52 = vadd.f32 %v2012_v45, %v1152_v24 }
 0x18d   :  { %v2744_v54 = vpop.eup %2015  ;;  %2035 = vpow2.f32 %v879_v47  ;;  %1010 = vadd.xlane.f32.xlu0 %v1009_v35  ;;  %v1012_v51 = vadd.f32 %v2014_v11, %v2012_v45  ;;  %v913_v60 = vmul.f32 1.442695, %v802_v3  ;;  %v435_v27 = vmul.f32 %v2399_v17, %v2571_v62 }
 0x18e   :  { %v2018_v41 = vpop.eup %2017  ;;  %3265 = vst [vmem:[#allocation23_spill] sm:$0xff] %v2755_v56  ;;  %497 = vst [vmem:[#allocation13 + $0x190] sm:$0xff] %v433_v5  ;;  %v805_v20 = vsub.f32 %v433_v5, %v2409_v21  ;;  %2037 = vpow2.f32 %v881_v33  ;;  %v806_v42 = vsub.f32 %v2755_v56, %v2409_v21  ;;  %v2765_v50 = vmul.f32 %v2399_v17, %v2584_v4 }
 0x18f   :  { %v2020_v43 = vpop.eup %2019  ;;  %498 = vst [vmem:[#allocation13 + $0x198] sm:$0xff] %v2755_v56  ;;  %1013 = vadd.xlane.f32.xlu1 %v1012_v51  ;;  %v1190_v24 = vadd.f32 %v2014_v11, %v1189_v15  ;;  %v1154_v3 = vadd.f32 %v2018_v41, %v1153_v52  ;;  %v915_v47 = vmul.f32 1.442695, %v803_v10  ;;  %499 = vst [vmem:[#allocation13 + $0x1a0] sm:$0xff] %v435_v27  ;;  %2039 = vpow2.f32 %v911_v37 }
 0x190   :  { %v2022_v39 = vpop.eup %2021  ;;  %v807_v62 = vsub.f32 %v435_v27, %v2409_v21  ;;  %v917_v35 = vmul.f32 1.442695, %v804_v46  ;;  %500 = vst [vmem:[#allocation13 + $0x1a8] sm:$0xff] %v2765_v50  ;;  %v1015_v5 = vadd.f32 %v2020_v43, %v2018_v41  ;;  %2041 = vpow2.f32 %v913_v60 }
 0x191   :  { %v2767_v45 = vpop.eup %2023  ;;  %v1191_v51 = vadd.f32 %v2020_v43, %v1190_v24  ;;  %v1155_v16 = vadd.f32 %v2022_v39, %v1154_v3  ;;  %v919_v4 = vmul.f32 1.442695, %v805_v20  ;;  %v921_v56 = vmul.f32 1.442695, %v806_v42 }
 0x192   :  { %v2026_v36 = vpop.eup %2025  ;;  %v808_v11 = vsub.f32 %v2765_v50, %v2409_v21  ;;  %1016 = vadd.xlane.f32.xlu0 %v1015_v5  ;;  %v437_v15 = vmul.f32 %v2399_v17, %v2603_v28  ;;  %v2779_v37 = vmul.f32 %v2399_v17, %v2614_v34  ;;  %2043 = vpow2.f32 %v915_v47 }
 0x193   :  { %v2771_v33 = vpop.eup %2027  ;;  %v923_v46 = vmul.f32 1.442695, %v807_v62  ;;  %v1018_v41 = vadd.f32 %v2026_v36, %v2022_v39  ;;  %v439_v43 = vmul.f32 %v2399_v17, %v2638_v1  ;;  %v1192_v60 = vadd.f32 %v2026_v36, %v1191_v51 }
 0x194   :  { %v2030_v19 = vpop.eup %2029  ;;  %2045 = vpow2.f32 %v917_v35  ;;  %501 = vst [vmem:[#allocation13 + $0x1b0] sm:$0xff] %v437_v15  ;;  %v809_v20 = vsub.f32 %v437_v15, %v2409_v21  ;;  %502 = vst [vmem:[#allocation13 + $0x1b8] sm:$0xff] %v2779_v37  ;;  %v810_v34 = vsub.f32 %v2779_v37, %v2409_v21  ;;  %v2791_v27 = vmul.f32 %v2399_v17, %v2644_v13 }
 0x195   :  { %v2032_v10 = vpop.eup %2031  ;;  %v1156_v28 = vadd.f32 %v2030_v19, %v1155_v16  ;;  %2047 = vpow2.f32 %v919_v4  ;;  %1019 = vadd.xlane.f32.xlu1 %v1018_v41  ;;  %503 = vst [vmem:[#allocation13 + $0x1c0] sm:$0xff] %v439_v43  ;;  %v925_v39 = vmul.f32 1.442695, %v808_v11  ;;  %v1030_v16 = vadd.f32 %v2616_v6, %v2605_v23 }
 0x196   :  { %v2783_v52 = vpop.eup %2033  ;;  %2049 = vpow2.f32 %v921_v56  ;;  %v1021_v42 = vadd.f32 %v2032_v10, %v2030_v19  ;;  %v1193_v24 = vadd.f32 %v2032_v10, %v1192_v60  ;;  %504 = vst [vmem:[#allocation13 + $0x1c8] sm:$0xff] %v2791_v27  ;;  %v927_v62 = vmul.f32 1.442695, %v809_v20 }
 0x197   :  { %v2793_v1 = vpop.eup %2035  ;;  %2051 = vpow2.f32 %v923_v46  ;;  %v811_v13 = vsub.f32 %v439_v43, %v2409_v21  ;;  %v441_v56 = vmul.f32 %v2399_v17, %v2659_v59  ;;  %v2806_v19 = vmul.f32 %v2399_v17, %v2666_v32 }
 0x198   :  { %v1157_v3 = vadd.f32 %v2793_v1, %v1156_v28  ;;  %v2799_v47 = vpop.eup %2037  ;;  %1022 = vadd.xlane.f32.xlu0 %v1021_v42  ;;  %v929_v5 = vmul.f32 1.442695, %v810_v34  ;;  %v812_v51 = vsub.f32 %v2791_v27, %v2409_v21  ;;  %2053 = vpow2.f32 %v925_v39 }
 0x199   :  { %v1194_v35 = vadd.f32 %v2799_v47, %v1193_v24  ;;  %1031 = vadd.xlane.f32.xlu1 %v1030_v16  ;;  %v2812_v4 = vpop.eup %2039  ;;  %505 = vst [vmem:[#allocation13 + $0x1d0] sm:$0xff] %v441_v56  ;;  %v813_v11 = vsub.f32 %v441_v56, %v2409_v21  ;;  %506 = vst [vmem:[#allocation13 + $0x1d8] sm:$0xff] %v2806_v19  ;;  %v814_v59 = vsub.f32 %v2806_v19, %v2409_v21 }
 0x19a   :  { %v1158_v36 = vadd.f32 %v2589_v2, %v1157_v3  ;;  %v2818_v32 = vpop.eup %2041  ;;  %v1036_v46 = vadd.f32 %v2691_v8, %v2654_v9  ;;  %v1027_v41 = vadd.f32 %v2597_v12, %v2589_v2  ;;  %2055 = vpow2.f32 %v927_v62 }
 0x19b   :  { %v1195_v10 = vadd.f32 %v2597_v12, %v1194_v35  ;;  %v931_v43 = vmul.f32 1.442695, %v811_v13  ;;  %v935_v60 = vmul.f32 1.442695, %v813_v11  ;;  %v937_v20 = vmul.f32 1.442695, %v814_v59 }
 0x19c   :  { %v1159_v15 = vadd.f32 %v2605_v23, %v1158_v36  ;;  %v2826_v28 = vpop.eup %2043  ;;  %2057 = vpow2.f32 %v929_v5  ;;  %v2830_v23 = vmul.f32 1.442695, %v812_v51  ;;  %1028 = vadd.xlane.f32.xlu0 %v1027_v41  ;;  %v1042_v2 = vadd.f32 %v2767_v45, %v2744_v54 }
 0x19d   :  { %v1196_v39 = vadd.f32 %v2616_v6, %v1195_v10  ;;  %1037 = vadd.xlane.f32.xlu1 %v1036_v46  ;;  %2059 = vpow2.f32 %v935_v60  ;;  %v443_v12 = vmul.f32 %v2399_v17, %v2678_v49  ;;  %v2840_v24 = vmul.f32 %v2399_v17, %v2683_v61 }
 0x19e   :  { %v1160_v34 = vadd.f32 %v2626_v44, %v1159_v15  ;;  %v2832_v42 = vpop.eup %2045  ;;  %2061 = vpow2.f32 %v937_v20  ;;  %v1033_v62 = vadd.f32 %v2632_v58, %v2626_v44  ;;  %v445_v61 = vmul.f32 %v2399_v17, %v2708_v40 }
 0x19f   :  { %v2842_v3 = vpop.eup %2047  ;;  %v1197_v16 = vadd.f32 %v2632_v58, %v1196_v39  ;;  %507 = vst [vmem:[#allocation13 + $0x1e0] sm:$0xff] %v443_v12  ;;  %v815_v56 = vsub.f32 %v443_v12, %v2409_v21  ;;  %508 = vst [vmem:[#allocation13 + $0x1e8] sm:$0xff] %v2840_v24  ;;  %v816_v49 = vsub.f32 %v2840_v24, %v2409_v21  ;;  %2063 = vpow2.f32 %v931_v43 }
 0x1a0   :  { %v1161_v6 = vadd.f32 %v2654_v9, %v1160_v34  ;;  %v2848_v13 = vpop.eup %2049  ;;  %v2858_v9 = vmul.f32 %v2399_v17, %v2715_v29  ;;  %1034 = vadd.xlane.f32.xlu0 %v1033_v62  ;;  %509 = vst [vmem:[#allocation13 + $0x1f0] sm:$0xff] %v445_v61  ;;  %v817_v51 = vsub.f32 %v445_v61, %v2409_v21  ;;  %v3266_v40 = vmov 0.0  }
 0x1a1   :  { %v2860_v36 = vpop.eup %2051  ;;  %v1198_v44 = vadd.f32 %v2691_v8, %v1197_v16  ;;  %1043 = vadd.xlane.f32.xlu1 %v1042_v2  ;;  %v939_v35 = vmul.f32 1.442695, %v815_v56  ;;  %v941_v5 = vmul.f32 1.442695, %v816_v49  ;;  %722 = vst.msk [vmem:[#allocation2] sm:$0xff] %vm721_vm1, %v3266_v40  ;;  %723 = vst.msk [vmem:[#allocation2 + $0x8] sm:$0xff] %vm721_vm1, %v3266_v40  ;;  %v1048_v11 = vadd.f32 %v2818_v32, %v2812_v4 }
 0x1a2   :  { %v1162_v58 = vadd.f32 %v2710_v63, %v1161_v6  ;;  %510 = vst [vmem:[#allocation13 + $0x1f8] sm:$0xff] %v2858_v9  ;;  %v818_v17 = vsub.f32 %v2858_v9, %v2409_v21  ;;  %724 = vst.msk [vmem:[#allocation2 + $0x10] sm:$0xff] %vm721_vm1, %v3266_v40  ;;  %v1039_v59 = vadd.f32 %v2717_v0, %v2710_v63  ;;  %v2054_v15 = vpop.eup %2053  ;;  %2065 = vpow2.f32 %v2830_v23 }
 0x1a3   :  { %725 = vst.msk [vmem:[#allocation2 + $0x18] sm:$0xff] %vm721_vm1, %v3266_v40  ;;  %726 = vst.msk [vmem:[#allocation2 + $0x20] sm:$0xff] %vm721_vm1, %v3266_v40  ;;  %v1199_v8 = vadd.f32 %v2717_v0, %v1198_v44  ;;  %v943_v10 = vmul.f32 1.442695, %v817_v51  ;;  %2067 = vpow2.f32 %v939_v35  ;;  %v1045_v34 = vadd.f32 %v2783_v52, %v2771_v33 }
 0x1a4   :  { %727 = vst.msk [vmem:[#allocation2 + $0x28] sm:$0xff] %vm721_vm1, %v3266_v40  ;;  %728 = vst.msk [vmem:[#allocation2 + $0x30] sm:$0xff] %vm721_vm1, %v3266_v40  ;;  %v1163_v29 = vadd.f32 %v2744_v54, %v1162_v58  ;;  %v945_v46 = vmul.f32 1.442695, %v818_v17  ;;  %1040 = vadd.xlane.f32.xlu0 %v1039_v59  ;;  %v2056_v60 = vpop.eup %2055  ;;  %2069 = vpow2.f32 %v941_v5  ;;  %v1054_v54 = vadd.f32 %v2848_v13, %v2842_v3 }
 0x1a5   :  { %729 = vst.msk [vmem:[#allocation2 + $0x38] sm:$0xff] %vm721_vm1, %v3266_v40  ;;  %730 = vst.msk [vmem:[#allocation2 + $0x40] sm:$0xff] %vm721_vm1, %v3266_v40  ;;  %v1200_v43 = vadd.f32 %v2767_v45, %v1199_v8  ;;  %1049 = vadd.xlane.f32.xlu1 %v1048_v11  ;;  %2071 = vpow2.f32 %v943_v10  ;;  %v1051_v62 = vadd.f32 %v2832_v42, %v2826_v28 }
 0x1a6   :  { %731 = vst.msk [vmem:[#allocation2 + $0x48] sm:$0xff] %vm721_vm1, %v3266_v40  ;;  %732 = vst.msk [vmem:[#allocation2 + $0x50] sm:$0xff] %vm721_vm1, %v3266_v40  ;;  %v1164_v41 = vadd.f32 %v2771_v33, %v1163_v29  ;;  %v2058_v20 = vpop.eup %2057  ;;  %2073 = vpow2.f32 %v945_v46  ;;  %v1057_v58 = vadd.f32 %v2054_v15, %v2860_v36 }
 0x1a7   :  { %733 = vst.msk [vmem:[#allocation2 + $0x58] sm:$0xff] %vm721_vm1, %v3266_v40  ;;  %734 = vst.msk [vmem:[#allocation2 + $0x60] sm:$0xff] %vm721_vm1, %v3266_v40  ;;  %v1201_v0 = vadd.f32 %v2783_v52, %v1200_v43  ;;  %v2060_v39 = vpop.eup %2059  ;;  %v1060_v16 = vadd.f32 %v2058_v20, %v2056_v60 }
 0x1a8   :  { %735 = vst.msk [vmem:[#allocation2 + $0x68] sm:$0xff] %vm721_vm1, %v3266_v40  ;;  %736 = vst.msk [vmem:[#allocation2 + $0x70] sm:$0xff] %vm721_vm1, %v3266_v40  ;;  %v1165_v63 = vadd.f32 %v2812_v4, %v1164_v41  ;;  %v2062_v45 = vpop.eup %2061  ;;  %1046 = vadd.xlane.f32.xlu0 %v1045_v34 }
 0x1a9   :  { %737 = vst.msk [vmem:[#allocation2 + $0x78] sm:$0xff] %vm721_vm1, %v3266_v40  ;;  %738 = vst.msk [vmem:[#allocation2 + $0x80] sm:$0xff] %vm721_vm1, %v3266_v40  ;;  %v1202_v2 = vadd.f32 %v2818_v32, %v1201_v0  ;;  %1055 = vadd.xlane.f32.xlu1 %v1054_v54  ;;  %v2064_v12 = vpop.eup %2063  ;;  %v1066_v56 = vadd.f32 %v2062_v45, %v2060_v39 }
 0x1aa   :  { %739 = vst.msk [vmem:[#allocation2 + $0x88] sm:$0xff] %vm721_vm1, %v3266_v40  ;;  %740 = vst.msk [vmem:[#allocation2 + $0x90] sm:$0xff] %vm721_vm1, %v3266_v40  ;;  %v1166_v23 = vadd.f32 %v2826_v28, %v1165_v63  ;;  %v1024_v28 = vadd.f32 %v2799_v47, %v2793_v1  ;;  %v2323_v47 = vmov 1966171168  }
 0x1ab   :  { %741 = vst.msk [vmem:[#allocation2 + $0x98] sm:$0xff] %vm721_vm1, %v3266_v40  ;;  %742 = vst.msk [vmem:[#allocation2 + $0xa0] sm:$0xff] %vm721_vm1, %v3266_v40  ;;  %v1203_v4 = vadd.f32 %v2832_v42, %v1202_v2  ;;  %v1221_v54 = vunpack.c.l.s4 %v2323_v47  ;;  %v950_v47 = vld [vmem:[#allocation2 + $0x18] sm:$0xff] }
 0x1ac   :  { %743 = vst.msk [vmem:[#allocation2 + $0xa8] sm:$0xff] %vm721_vm1, %v3266_v40  ;;  %744 = vst.msk [vmem:[#allocation2 + $0xb0] sm:$0xff] %vm721_vm1, %v3266_v40  ;;  %v1167_v6 = vadd.f32 %v2842_v3, %v1166_v23  ;;  %1052 = vadd.xlane.f32.xlu0 %v1051_v62  ;;  %v2066_v49 = vpop.eup %2065 }
 0x1ad   :  { %745 = vst.msk [vmem:[#allocation2 + $0xb8] sm:$0xff] %vm721_vm1, %v3266_v40  ;;  %746 = vst.msk [vmem:[#allocation2 + $0xc0] sm:$0xff] %vm721_vm1, %v3266_v40  ;;  %v1204_v33 = vadd.f32 %v2848_v13, %v1203_v4  ;;  %1061 = vadd.xlane.f32.xlu1 %v1060_v16  ;;  %v2068_v32 = vpop.eup %2067 }
 0x1ae   :  { %747 = vst.msk [vmem:[#allocation2 + $0xc8] sm:$0xff] %vm721_vm1, %v3266_v40  ;;  %748 = vst.msk [vmem:[#allocation2 + $0xd0] sm:$0xff] %vm721_vm1, %v3266_v40  ;;  %v1168_v52 = vadd.f32 %v2860_v36, %v1167_v6  ;;  %v2070_v3 = vpop.eup %2069 }
 0x1af   :  { %749 = vst.msk [vmem:[#allocation2 + $0xd8] sm:$0xff] %vm721_vm1, %v3266_v40  ;;  %750 = vst.msk [vmem:[#allocation2 + $0xe0] sm:$0xff] %vm721_vm1, %v3266_v40  ;;  %v1205_v61 = vadd.f32 %v2054_v15, %v1204_v33  ;;  %v2072_v35 = vpop.eup %2071  ;;  %v1069_v8 = vadd.f32 %v2070_v3, %v2068_v32  ;;  %v1142_v33 = vld [vmem:[#allocation3] sm:$0x3] }
 0x1b0   :  { %751 = vst.msk [vmem:[#allocation2 + $0xe8] sm:$0xff] %vm721_vm1, %v3266_v40  ;;  %752 = vst.msk [vmem:[#allocation2 + $0xf0] sm:$0xff] %vm721_vm1, %v3266_v40  ;;  %v1169_v44 = vadd.f32 %v2056_v60, %v1168_v52  ;;  %1058 = vadd.xlane.f32.xlu0 %v1057_v58  ;;  %v2074_v42 = vpop.eup %2073 }
 0x1b1   :  { %753 = vst.msk [vmem:[#allocation2 + $0xf8] sm:$0xff] %vm721_vm1, %v3266_v40  ;;  %v1206_v5 = vadd.f32 %v2058_v20, %v1205_v61  ;;  %1067 = vadd.xlane.f32.xlu1 %v1066_v56  ;;  %v1063_v40 = vadd.f32 %v2066_v49, %v2064_v12  ;;  %v1072_v59 = vadd.f32 %v2074_v42, %v2072_v35 }
 0x1b2   :  { %v1170_v51 = vadd.f32 %v2064_v12, %v1169_v44 }
 0x1b3   :  { %v1207_v13 = vadd.f32 %v2066_v49, %v1206_v5  ;;  %v947_v49 = vld [vmem:[#allocation2] sm:$0xff]  ;;  %v2142_v5 = vld [vmem:[#allocation13 + $0x10] sm:$0xff] }
 0x1b4   :  { %v1171_v17 = vadd.f32 %v2060_v39, %v1170_v51  ;;  %1064 = vadd.xlane.f32.xlu0 %v1063_v40  ;;  %v1222_v39 = vunpack.c.0.s8 %v1221_v54  ;;  %v948_v51 = vld [vmem:[#allocation2 + $0x8] sm:$0xff] }
 0x1b5   :  { %v1208_v29 = vadd.f32 %v2062_v45, %v1207_v13  ;;  %1025 = vadd.xlane.f32.xlu1 %v1024_v28  ;;  %v3267_v45 = vlaneseq  ;;  %v2143_v28 = vld [vmem:[#allocation13 + $0x8] sm:$0xff] }
 0x1b6   :  { %v1172_v11 = vadd.f32 %v2068_v32, %v1171_v17  ;;  %v2141_v32 = vld [vmem:[#allocation13] sm:$0xff] }
 0x1b7   :  { %v1209_v36 = vadd.f32 %v2070_v3, %v1208_v29  ;;  %v2959_v23 = vshrl.u32 %v3267_v45, 7  ;;  %v2966_v3 = vand.u32 127, %v3267_v45  ;;  %v949_v29 = vld [vmem:[#allocation2 + $0x10] sm:$0xff] }
 0x1b8   :  { %v1173_v15 = vadd.f32 %v2072_v35, %v1172_v11  ;;  %1070 = vadd.xlane.f32.xlu0 %v1069_v8  ;;  %v2144_v8 = vld [vmem:[#allocation13 + $0x20] sm:$0xff] }
 0x1b9   :  { %v1210_v46 = vadd.f32 %v2074_v42, %v1209_v36  ;;  %1073 = vadd.xlane.f32.xlu1 %v1072_v59  ;;  %v1225_v4 = vsub.s32 %v1222_v39, %v2959_v23  ;;  %v1247_v61 = vadd.s32 8, %v2959_v23  ;;  %v1248_v35 = vadd.s32 16, %v2959_v23 }
 0x1ba   :  { %v1174_v10 = vrot.slane %v1173_v15, 4  ;;  %v1249_v18 = vadd.s32 24, %v2959_v23  ;;  %vm1281_vm3 = vcmp.eq.s32.totalorder %v2959_v23, %v2966_v3  ;;  %v1250_v13 = vadd.s32 32, %v2959_v23 }
 0x1bb   :  { %v1211_v43 = vrot.slane %v1210_v46, 4  ;;  %vm1283_vm2 = vcmp.eq.s32.totalorder %v1247_v61, %v2966_v3  ;;  %vm1285_vm4 = vcmp.eq.s32.totalorder %v1248_v35, %v2966_v3  ;;  %v1251_v11 = vadd.s32 40, %v2959_v23  ;;  %v2152_v35 = vld [vmem:[#allocation13 + $0x70] sm:$0xff] }
 0x1bc   :  { %v1175_v41 = vadd.f32 %v1174_v10, %v1173_v15  ;;  %v1348_v40 = vsel %vm1283_vm2, %v2142_v5, 0.0  ;;  %vm1287_vm5 = vcmp.eq.s32.totalorder %v1249_v18, %v2966_v3  ;;  %v1346_v59 = vsel %vm1281_vm3, %v2141_v32, 0.0  ;;  %v2145_v15 = vld [vmem:[#allocation13 + $0x18] sm:$0xff] }
 0x1bd   :  { %v1212_v1 = vadd.f32 %v1211_v43, %v1210_v46  ;;  %v1350_v36 = vsel %vm1285_vm4, %v2144_v8, 0.0  ;;  %v1411_v46 = vadd.f32 %v1348_v40, %v1346_v59  ;;  %vm1289_vm6 = vcmp.eq.s32.totalorder %v1250_v13, %v2966_v3  ;;  %v2155_v59 = vld [vmem:[#allocation13 + $0x90] sm:$0xff] }
 0x1be   :  { %v1176_v60 = vrot.slane %v1175_v41, 2  ;;  %vm1291_vm7 = vcmp.eq.s32.totalorder %v1251_v11, %v2966_v3 }
 0x1bf   :  { %v1213_v63 = vrot.slane %v1212_v1, 2  ;;  %v1413_v54 = vadd.f32 %v1411_v46, %v1350_v36  ;;  %v1259_v46 = vadd.s32 104, %v2959_v23 }
 0x1c0   :  { %v1177_v20 = vadd.f32 %v1176_v60, %v1175_v41  ;;  %v1252_v41 = vadd.s32 48, %v2959_v23  ;;  %v2146_v60 = vld [vmem:[#allocation13 + $0x30] sm:$0xff] }
 0x1c1   :  { %v1214_v34 = vadd.f32 %v1213_v63, %v1212_v1  ;;  %v1352_v1 = vsel %vm1287_vm5, %v2146_v60, 0.0  ;;  %v2147_v63 = vld [vmem:[#allocation13 + $0x40] sm:$0xff]  ;;  %vm1307_vm15 = vcmp.eq.s32.totalorder %v1259_v46, %v2966_v3  ;;  %v957_v46 = vld [vmem:[#allocation2 + $0x50] sm:$0xff] }
 0x1c2   :  { %v1178_v0 = vrot.slane %v1177_v20, 1  ;;  %v1415_v45 = vadd.f32 %v1413_v54, %v1352_v1  ;;  %vm1293_vm8 = vcmp.eq.s32.totalorder %v1252_v41, %v2966_v3 }
 0x1c3   :  { %v1215_v12 = vrot.slane %v1214_v34, 1 }
 0x1c4   :  { %v1179_v2 = vadd.f32 %v1178_v0, %v1177_v20  ;;  %v1253_v20 = vadd.s32 56, %v2959_v23  ;;  %v1354_v0 = vsel %vm1289_vm6, %v2147_v63, 0.0 }
 0x1c5   :  { %v1216_v6 = vadd.f32 %v1215_v12, %v1214_v34  ;;  %v2148_v34 = vld [vmem:[#allocation13 + $0x28] sm:$0xff] }
 0x1c6   :  { %vm1295_vm9 = vcmp.eq.s32.totalorder %v1253_v20, %v2966_v3 }
 0x1c7   :  { %v1219_v16 = vcombine.low %v1179_v2, %v1216_v6  ;;  %v1254_v2 = vadd.s32 64, %v2959_v23  ;;  %v2149_v6 = vld [vmem:[#allocation13 + $0x50] sm:$0xff] }
 0x1c9   :  { %v1226_v62 = vrot.slane %v1219_v16, %v1225_v4  ;;  %v951_v16 = vld [vmem:[#allocation2 + $0x20] sm:$0xff]  ;;  %vm1297_vm10 = vcmp.eq.s32.totalorder %v1254_v2, %v2966_v3 }
 0x1cb   :  { %v1233_v52 = vrot.slane %v1226_v62, %v1225_v4  ;;  %v1356_v4 = vsel %vm1291_vm7, %v2149_v6, 0.0  ;;  %v1417_v62 = vadd.f32 %v1415_v45, %v1354_v0  ;;  %v1261_v0 = vadd.s32 120, %v2959_v23 }
 0x1cc   :  { %v1372_v45 = vsel %vm1307_vm15, %v2664_v25, 0.0 }
 0x1cd   :  { %v1235_v56 = vadd.f32 %v1233_v52, %v1142_v33  ;;  %v1255_v33 = vadd.s32 72, %v2959_v23  ;;  %v2150_v52 = vld [vmem:[#allocation13 + $0x60] sm:$0xff]  ;;  %v1419_v61 = vadd.f32 %v1417_v62, %v1356_v4  ;;  %vm1311_vm2 = vcmp.eq.s32.totalorder %v1261_v0, %v2966_v3 }
 0x1ce   :  { %v1262_v4 = vadd.s32 128, %v2959_v23 }
 0x1cf   :  { %1240 = vst.msk [vmem:[#allocation3] sm:$0x3] %vm2402_vm0, %v1235_v56  ;;  %v1358_v56 = vsel %vm1293_vm8, %v2150_v52, 0.0  ;;  %vm1299_vm11 = vcmp.eq.s32.totalorder %v1255_v33, %v2966_v3 }
 0x1d0   :  { %v1421_v18 = vadd.f32 %v1419_v61, %v1358_v56  ;;  %v1364_v36 = vsel %vm1299_vm11, %v2155_v59, 0.0  ;;  %v955_v61 = vld [vmem:[#allocation2 + $0x40] sm:$0xff] }
 0x1e5   :  { %511 = vxpose.xlu0.b32.start [1/16] %v2141_v32, 128 }
 0x1e9   :  { %512 = vxpose.xlu0.b32.cont [2/16] %v2142_v5, 128  ;;  %v1360_v5 = vsel %vm1295_vm9, %v2152_v35, 0.0 }
 0x1ec   :  { %v981_v44 = vpop.xlane.xlu0 %980  ;;  %543 = vxpose.xlu1.b32.start [1/16] %v2143_v28, 128  ;;  %v1257_v28 = vadd.s32 88, %v2959_v23 }
 0x1ed   :  { %v1075_v58 = vadd.f32 %v981_v44, %v947_v49  ;;  %513 = vxpose.xlu0.b32.cont [3/16] %v2144_v8, 128  ;;  %v2151_v49 = vld [vmem:[#allocation13 + $0x38] sm:$0xff]  ;;  %v1256_v44 = vadd.s32 80, %v2959_v23  ;;  %v1423_v8 = vadd.f32 %v1421_v18, %v1360_v5  ;;  %v3019_v18 = vld [vmem:[#allocation13 + $0x108] sm:$0xff] }
 0x1ee   :  { %vm1303_vm13 = vcmp.eq.s32.totalorder %v1257_v28, %v2966_v3 }
 0x1ef   :  { %1108 = vst.msk [vmem:[#allocation2] sm:$0xff] %vm721_vm1, %v1075_v58  ;;  %vm1301_vm12 = vcmp.eq.s32.totalorder %v1256_v44, %v2966_v3  ;;  %v1368_v20 = vsel %vm1303_vm13, %v2608_v31, 0.0  ;;  %v954_v31 = vld [vmem:[#allocation2 + $0x38] sm:$0xff]  ;;  %v1263_v44 = vadd.s32 136, %v2959_v23 }
 0x1f0   :  { %v984_v42 = vpop.xlane.xlu0 %983  ;;  %544 = vxpose.xlu1.b32.cont [2/16] %v2145_v15, 128  ;;  %v953_v15 = vld [vmem:[#allocation2 + $0x30] sm:$0xff]  ;;  %v1366_v41 = vsel %vm1301_vm12, %v2576_v7, 0.0 }
 0x1f1   :  { %v1076_v17 = vadd.f32 %v984_v42, %v948_v51  ;;  %514 = vxpose.xlu0.b32.cont [4/16] %v2146_v60, 128  ;;  %v952_v51 = vld [vmem:[#allocation2 + $0x28] sm:$0xff] }
 0x1f2   :  { %v2153_v42 = vld [vmem:[#allocation13 + $0x80] sm:$0xff] }
 0x1f3   :  { %1109 = vst.msk [vmem:[#allocation2 + $0x8] sm:$0xff] %vm721_vm1, %v1076_v17  ;;  %v1362_v13 = vsel %vm1297_vm10, %v2153_v42, 0.0  ;;  %v2154_v17 = vld [vmem:[#allocation13 + $0x48] sm:$0xff] }
 0x1f4   :  { %v987_v10 = vpop.xlane.xlu1 %986  ;;  %545 = vxpose.xlu1.b32.cont [3/16] %v2148_v34, 128  ;;  %v2157_v34 = vld [vmem:[#allocation13 + $0x68] sm:$0xff] }
 0x1f5   :  { %v1077_v43 = vadd.f32 %v987_v10, %v949_v29  ;;  %515 = vxpose.xlu0.b32.cont [5/16] %v2147_v63, 128  ;;  %v1258_v29 = vadd.s32 96, %v2959_v23  ;;  %v1425_v10 = vadd.f32 %v1423_v8, %v1362_v13  ;;  %v1264_v13 = vadd.s32 144, %v2959_v23 }
 0x1f7   :  { %1110 = vst.msk [vmem:[#allocation2 + $0x10] sm:$0xff] %vm721_vm1, %v1077_v43  ;;  %v2156_v43 = vld [vmem:[#allocation13 + $0x58] sm:$0xff]  ;;  %v1427_v1 = vadd.f32 %v1425_v10, %v1364_v36  ;;  %vm1305_vm14 = vcmp.eq.s32.totalorder %v1258_v29, %v2966_v3  ;;  %v2163_v29 = vld [vmem:[#allocation13 + $0xb0] sm:$0xff]  ;;  %v2165_v36 = vld [vmem:[#allocation13 + $0xa8] sm:$0xff] }
 0x1f8   :  { %v990_v39 = vpop.xlane.xlu1 %989  ;;  %546 = vxpose.xlu1.b32.cont [4/16] %v2151_v49, 128  ;;  %v1370_v7 = vsel %vm1305_vm14, %v2642_v55, 0.0 }
 0x1f9   :  { %v1078_v12 = vadd.f32 %v990_v39, %v950_v47  ;;  %516 = vxpose.xlu0.b32.cont [6/16] %v2149_v6, 128  ;;  %v1260_v47 = vadd.s32 112, %v2959_v23  ;;  %v1429_v63 = vadd.f32 %v1427_v1, %v1366_v41  ;;  %v2158_v6 = vld [vmem:[#allocation13 + $0x78] sm:$0xff]  ;;  %v3032_v41 = vld [vmem:[#allocation13 + $0x128] sm:$0xff]  ;;  %v1266_v1 = vadd.s32 160, %v2959_v23 }
 0x1fb   :  { %1111 = vst.msk [vmem:[#allocation2 + $0x18] sm:$0xff] %vm721_vm1, %v1078_v12  ;;  %v1431_v39 = vadd.f32 %v1429_v63, %v1368_v20  ;;  %vm1309_vm0 = vcmp.eq.s32.totalorder %v1260_v47, %v2966_v3  ;;  %v958_v20 = vld [vmem:[#allocation2 + $0x58] sm:$0xff] }
 0x1fc   :  { %v993_v32 = vpop.xlane.xlu0 %992  ;;  %547 = vxpose.xlu1.b32.cont [5/16] %v2154_v17, 128  ;;  %v1374_v12 = vsel %vm1309_vm0, %v2697_v26, 0.0 }
 0x1fd   :  { %v1079_v58 = vadd.f32 %v993_v32, %v951_v16  ;;  %517 = vxpose.xlu0.b32.cont [7/16] %v2150_v52, 128  ;;  %v1433_v2 = vadd.f32 %v1431_v39, %v1370_v7  ;;  %v3013_v16 = vadd.s32 128, %v2966_v3  ;;  %v1376_v52 = vsel %vm1311_vm2, %v2726_v22, 0.0  ;;  %v2159_v32 = vld [vmem:[#allocation13 + $0x88] sm:$0xff]  ;;  %v3038_v7 = vld [vmem:[#allocation13 + $0x138] sm:$0xff] }
 0x1fe   :  { %v1267_v39 = vadd.s32 168, %v2959_v23 }
 0x1ff   :  { %1112 = vst.msk [vmem:[#allocation2 + $0x20] sm:$0xff] %vm721_vm1, %v1079_v58  ;;  %v1435_v62 = vadd.f32 %v1433_v2, %v1372_v45  ;;  %vm1314_vm3 = vcmp.eq.s32.totalorder %v1262_v4, %v3013_v16  ;;  %vm1316_vm4 = vcmp.eq.s32.totalorder %v1263_v44, %v3013_v16  ;;  %vm1318_vm5 = vcmp.eq.s32.totalorder %v1264_v13, %v3013_v16  ;;  %v959_v2 = vld [vmem:[#allocation2 + $0x60] sm:$0xff]  ;;  %v960_v4 = vld [vmem:[#allocation2 + $0x68] sm:$0xff]  ;;  %v966_v13 = vld [vmem:[#allocation2 + $0x98] sm:$0xff] }
 0x200   :  { %v996_v40 = vpop.xlane.xlu1 %995  ;;  %548 = vxpose.xlu1.b32.cont [6/16] %v2156_v43, 128  ;;  %v1379_v28 = vsel %vm1314_vm3, %v3019_v18, 0.0  ;;  %v1383_v43 = vsel %vm1318_vm5, %v3032_v41, 0.0  ;;  %vm1322_vm7 = vcmp.eq.s32.totalorder %v1266_v1, %v3013_v16  ;;  %vm1324_vm8 = vcmp.eq.s32.totalorder %v1267_v39, %v3013_v16  ;;  %v965_v1 = vld [vmem:[#allocation2 + $0x90] sm:$0xff] }
 0x201   :  { %v1080_v11 = vadd.f32 %v996_v40, %v952_v51  ;;  %518 = vxpose.xlu0.b32.cont [8/16] %v2152_v35, 128  ;;  %v1437_v49 = vadd.f32 %v1435_v62, %v1374_v12  ;;  %v2160_v35 = vld [vmem:[#allocation13 + $0xa0] sm:$0xff] }
 0x202   :  { %v956_v51 = vld [vmem:[#allocation2 + $0x48] sm:$0xff] }
 0x203   :  { %1113 = vst.msk [vmem:[#allocation2 + $0x28] sm:$0xff] %vm721_vm1, %v1080_v11  ;;  %v1439_v58 = vadd.f32 %v1437_v49, %v1376_v52  ;;  %v3025_v11 = vld [vmem:[#allocation13 + $0x118] sm:$0xff]  ;;  %v961_v52 = vld [vmem:[#allocation2 + $0x70] sm:$0xff] }
 0x204   :  { %v999_v60 = vpop.xlane.xlu0 %998  ;;  %549 = vxpose.xlu1.b32.cont [7/16] %v2157_v34, 128 }
 0x205   :  { %v1081_v54 = vadd.f32 %v999_v60, %v953_v15  ;;  %519 = vxpose.xlu0.b32.cont [9/16] %v2153_v42, 128  ;;  %v2162_v42 = vld [vmem:[#allocation13 + $0x98] sm:$0xff]  ;;  %v1442_v17 = vadd.f32 %v1439_v58, %v1379_v28  ;;  %v1265_v15 = vadd.s32 152, %v2959_v23  ;;  %v1489_v58 = vld [vmem:[#allocation2 + $0x8] sm:$0xff] }
 0x206   :  { %v2167_v60 = vld [vmem:[#allocation13 + $0xb8] sm:$0xff]  ;;  %v3062_v28 = vld [vmem:[#allocation13 + $0x168] sm:$0xff]  ;;  %2075 = vlog2.f32 %v1489_v58 }
 0x207   :  { %1114 = vst.msk [vmem:[#allocation2 + $0x30] sm:$0xff] %vm721_vm1, %v1081_v54  ;;  %vm1320_vm6 = vcmp.eq.s32.totalorder %v1265_v15, %v3013_v16 }
 0x208   :  { %550 = vxpose.xlu1.b32.cont [8/16] %v2158_v6, 128 }
 0x209   :  { %520 = vxpose.xlu0.b32.cont [10/16] %v2155_v59, 128  ;;  %v1381_v59 = vsel %vm1316_vm4, %v3025_v11, 0.0  ;;  %vm1710_vm4 = vcmask 1040384  }
 0x20a   :  { %v1444_v10 = vadd.f32 %v1442_v17, %v1381_v59  ;;  %v963_v17 = vld [vmem:[#allocation2 + $0x80] sm:$0xff] }
 0x20c   :  { %551 = vxpose.xlu1.b32.cont [9/16] %v2159_v32, 128  ;;  %v1446_v47 = vadd.f32 %v1444_v10, %v1383_v43  ;;  %v1269_v32 = vadd.s32 184, %v2959_v23  ;;  %v1492_v43 = vld [vmem:[#allocation2 + $0x20] sm:$0xff] }
 0x20d   :  { %v1002_v33 = vpop.xlane.xlu1 %1001  ;;  %521 = vxpose.xlu0.b32.cont [11/16] %v2160_v35, 128 }
 0x20e   :  { %v1082_v56 = vadd.f32 %v1002_v33, %v954_v31  ;;  %v3047_v31 = vld [vmem:[#allocation13 + $0x148] sm:$0xff]  ;;  %vm1328_vm10 = vcmp.eq.s32.totalorder %v1269_v32, %v3013_v16  ;;  %v3268_v32 = vld [vmem:[#allocation23_spill] sm:$0xff] }
 0x20f   :  { %v1387_v12 = vsel %vm1322_vm7, %v3047_v31, 0.0 }
 0x210   :  { %1115 = vst.msk [vmem:[#allocation2 + $0x38] sm:$0xff] %vm721_vm1, %v1082_v56  ;;  %552 = vxpose.xlu1.b32.cont [10/16] %v2162_v42, 128  ;;  %v3055_v56 = vld [vmem:[#allocation13 + $0x158] sm:$0xff]  ;;  %v1490_v42 = vld [vmem:[#allocation2 + $0x10] sm:$0xff] }
 0x211   :  { %v1005_v3 = vpop.xlane.xlu0 %1004  ;;  %522 = vxpose.xlu0.b32.cont [12/16] %v2163_v29, 128  ;;  %v1389_v49 = vsel %vm1324_vm8, %v3055_v56, 0.0  ;;  %v1491_v29 = vld [vmem:[#allocation2 + $0x18] sm:$0xff] }
 0x212   :  { %v1083_v5 = vadd.f32 %v1005_v3, %v955_v61 }
 0x214   :  { %1116 = vst.msk [vmem:[#allocation2 + $0x40] sm:$0xff] %vm721_vm1, %v1083_v5  ;;  %v1008_v40 = vpop.xlane.xlu1 %1007  ;;  %553 = vxpose.xlu1.b32.cont [11/16] %v2165_v36, 128  ;;  %v1488_v5 = vld [vmem:[#allocation2] sm:$0xff]  ;;  %v2173_v36 = vld [vmem:[#allocation13 + $0x110] sm:$0xff] }
 0x215   :  { %v1084_v8 = vadd.f32 %v1008_v40, %v956_v51  ;;  %523 = vxpose.xlu0.b32.cont [13/16] %v2642_v55, 128  ;;  %v1385_v55 = vsel %vm1320_vm6, %v3038_v7, 0.0  ;;  %v1270_v40 = vadd.s32 192, %v2959_v23  ;;  %2077 = vlog2.f32 %v1488_v5 }
 0x216   :  { %v1448_v45 = vadd.f32 %v1446_v47, %v1385_v55  ;;  %2079 = vlog2.f32 %v1490_v42 }
 0x217   :  { %1117 = vst.msk [vmem:[#allocation2 + $0x48] sm:$0xff] %vm721_vm1, %v1084_v8  ;;  %vm1330_vm11 = vcmp.eq.s32.totalorder %v1270_v40, %v3013_v16  ;;  %2081 = vlog2.f32 %v1491_v29  ;;  %v1274_v40 = vadd.s32 224, %v2959_v23 }
 0x218   :  { %554 = vxpose.xlu1.b32.cont [12/16] %v2167_v60, 128  ;;  %v1450_v62 = vadd.f32 %v1448_v45, %v1387_v12  ;;  %v968_v60 = vld [vmem:[#allocation2 + $0xa8] sm:$0xff]  ;;  %2083 = vlog2.f32 %v1492_v43  ;;  %v1395_v39 = vsel %vm1330_vm11, %v2730_v38, 0.0  ;;  %v1272_v45 = vadd.s32 208, %v2959_v23  ;;  %v967_v12 = vld [vmem:[#allocation2 + $0xa0] sm:$0xff]  ;;  %v2076_v38 = vpop.eup %2075 }
 0x219   :  { %524 = vxpose.xlu0.b32.cont [14/16] %v2664_v25, 128  ;;  %v971_v43 = vld [vmem:[#allocation2 + $0xc0] sm:$0xff]  ;;  %vm1338_vm15 = vcmp.eq.s32.totalorder %v1274_v40, %v3013_v16 }
 0x21a   :  { %v1011_v54 = vpop.xlane.xlu0 %1010  ;;  %v1452_v61 = vadd.f32 %v1450_v62, %v1389_v49  ;;  %vm1334_vm13 = vcmp.eq.s32.totalorder %v1272_v45, %v3013_v16 }
 0x21b   :  { %v1085_v63 = vadd.f32 %v1011_v54, %v957_v46  ;;  %v1271_v54 = vadd.s32 200, %v2959_v23  ;;  %v1496_v58 = vld [vmem:[#allocation2 + $0x40] sm:$0xff]  ;;  %v1399_v29 = vsel %vm1334_vm13, %v2765_v50, 0.0  ;;  %v3096_v50 = vadd.s32 240, %v2959_v23 }
 0x21c   :  { %v1014_v0 = vpop.xlane.xlu1 %1013  ;;  %555 = vxpose.xlu1.b32.cont [13/16] %v2649_v30, 128  ;;  %v1268_v30 = vadd.s32 176, %v2959_v23 }
 0x21d   :  { %1118 = vst.msk [vmem:[#allocation2 + $0x50] sm:$0xff] %vm721_vm1, %v1085_v63  ;;  %v1086_v34 = vadd.f32 %v1014_v0, %v958_v20  ;;  %525 = vxpose.xlu0.b32.cont [15/16] %v2697_v26, 128  ;;  %v1493_v20 = vld [vmem:[#allocation2 + $0x28] sm:$0xff]  ;;  %vm1332_vm12 = vcmp.eq.s32.totalorder %v1271_v54, %v3013_v16  ;;  %vm1342_vm2 = vcmp.eq.s32.totalorder %v3096_v50, %v3013_v16 }
 0x21e   :  { %vm1326_vm9 = vcmp.eq.s32.totalorder %v1268_v30, %v3013_v16  ;;  %v2174_v0 = vld [vmem:[#allocation13 + $0x120] sm:$0xff]  ;;  %2085 = vlog2.f32 %v1493_v20  ;;  %v1495_v30 = vld [vmem:[#allocation2 + $0x38] sm:$0xff] }
 0x21f   :  { %1119 = vst.msk [vmem:[#allocation2 + $0x58] sm:$0xff] %vm721_vm1, %v1086_v34  ;;  %v1017_v25 = vpop.xlane.xlu0 %1016 }
 0x220   :  { %v1087_v6 = vadd.f32 %v1017_v25, %v959_v2  ;;  %556 = vxpose.xlu1.b32.cont [14/16] %v2681_v53, 128  ;;  %v964_v53 = vld [vmem:[#allocation2 + $0x88] sm:$0xff]  ;;  %v1494_v2 = vld [vmem:[#allocation2 + $0x30] sm:$0xff]  ;;  %v970_v25 = vld [vmem:[#allocation2 + $0xb8] sm:$0xff] }
 0x221   :  { %526 = vxpose.xlu0.b32.end [16/16] %v2726_v22, 128  ;;  %v2171_v22 = vld [vmem:[#allocation13 + $0x100] sm:$0xff]  ;;  %2087 = vlog2.f32 %v1494_v2 }
 0x222   :  { %1120 = vst.msk [vmem:[#allocation2 + $0x60] sm:$0xff] %vm721_vm1, %v1087_v6  ;;  %v1020_v33 = vpop.xlane.xlu1 %1019 }
 0x223   :  { %v1088_v26 = vadd.f32 %v1020_v33, %v960_v4  ;;  %v1694_v4 = vld [vmem:[#allocation3] sm:$0x3]  ;;  %v2175_v33 = vld [vmem:[#allocation13 + $0x130] sm:$0xff] }
 0x224   :  { %557 = vxpose.xlu1.b32.cont [15/16] %v2706_v14, 128  ;;  %v1391_v14 = vsel %vm1326_vm9, %v3062_v28, 0.0  ;;  %2089 = vlog2.f32 %v1694_v4 }
 0x225   :  { %1121 = vst.msk [vmem:[#allocation2 + $0x68] sm:$0xff] %vm721_vm1, %v1088_v26  ;;  %v1023_v44 = vpop.xlane.xlu0 %1022  ;;  %575 = vxpose.xlu0.b32.start [1/16] %v2171_v22, 128  ;;  %v1454_v8 = vadd.f32 %v1452_v61, %v1391_v14  ;;  %v1397_v61 = vsel %vm1332_vm12, %v3268_v32, 0.0  ;;  %v969_v22 = vld [vmem:[#allocation2 + $0xb0] sm:$0xff]  ;;  %2091 = vlog2.f32 %v1495_v30  ;;  %v1497_v14 = vld [vmem:[#allocation2 + $0x48] sm:$0xff] }
 0x226   :  { %v1032_v35 = vpop.xlane.xlu1 %1031  ;;  %v1089_v3 = vadd.f32 %v1023_v44, %v961_v52  ;;  %v1273_v44 = vadd.s32 216, %v2959_v23  ;;  %2093 = vlog2.f32 %v1496_v58 }
 0x227   :  { %v1092_v51 = vadd.f32 %v1032_v35, %v964_v53  ;;  %v2078_v53 = vpop.eup %2077  ;;  %v972_v35 = vld [vmem:[#allocation2 + $0xc8] sm:$0xff]  ;;  %2095 = vlog2.f32 %v1497_v14 }
 0x228   :  { %1122 = vst.msk [vmem:[#allocation2 + $0x70] sm:$0xff] %vm721_vm1, %v1089_v3  ;;  %558 = vxpose.xlu1.b32.end [16/16] %v2733_v48, 128  ;;  %v1393_v48 = vsel %vm1328_vm10, %v2703_v57, 0.0  ;;  %v2080_v3 = vpop.eup %2079  ;;  %vm1336_vm14 = vcmp.eq.s32.totalorder %v1273_v44, %v3013_v16  ;;  %v2178_v44 = vld [vmem:[#allocation13 + $0x160] sm:$0xff] }
 0x229   :  { %1125 = vst.msk [vmem:[#allocation2 + $0x88] sm:$0xff] %vm721_vm1, %v1092_v51  ;;  %576 = vxpose.xlu0.b32.cont [2/16] %v2173_v36, 128  ;;  %v1029_v15 = vpop.xlane.xlu0 %1028  ;;  %v1456_v47 = vadd.f32 %v1454_v8, %v1393_v48  ;;  %v1523_v51 = vmul.f32 0.6931472, %v2076_v38  ;;  %v2082_v8 = vpop.eup %2081  ;;  %v1498_v48 = vld [vmem:[#allocation2 + $0x50] sm:$0xff]  ;;  %v1500_v30 = vld [vmem:[#allocation2 + $0x60] sm:$0xff] }
 0x22a   :  { %v1038_v59 = vpop.xlane.xlu1 %1037  ;;  %v1091_v46 = vadd.f32 %v1029_v15, %v963_v17  ;;  %v974_v15 = vld [vmem:[#allocation2 + $0xd8] sm:$0xff]  ;;  %v1527_v20 = vmul.f32 0.6931472, %v2082_v8  ;;  %2097 = vlog2.f32 %v1498_v48 }
 0x22b   :  { %v1094_v10 = vadd.f32 %v1038_v59, %v966_v13  ;;  %v1458_v6 = vadd.f32 %v1456_v47, %v1395_v39  ;;  %v2176_v13 = vld [vmem:[#allocation13 + $0x140] sm:$0xff]  ;;  %v3093_v47 = vadd.s32 232, %v2959_v23  ;;  %v1585_v54 = vadd.f32 %v1523_v51, %v2409_v21 }
 0x22c   :  { %1124 = vst.msk [vmem:[#allocation2 + $0x80] sm:$0xff] %vm721_vm1, %v1091_v46  ;;  %v1525_v46 = vmul.f32 0.6931472, %v2080_v3  ;;  %v1501_v32 = vld [vmem:[#allocation2 + $0x68] sm:$0xff]  ;;  %v1403_v51 = vsel %vm1338_vm15, %v2791_v27, 0.0 }
 0x22d   :  { %1127 = vst.msk [vmem:[#allocation2 + $0x98] sm:$0xff] %vm721_vm1, %v1094_v10  ;;  %577 = vxpose.xlu0.b32.cont [3/16] %v2174_v0, 128  ;;  %v1035_v55 = vpop.xlane.xlu0 %1034  ;;  %v1460_v5 = vadd.f32 %v1458_v6, %v1397_v61  ;;  %v1521_v10 = vmul.f32 0.6931472, %v2078_v53  ;;  %vm1340_vm0 = vcmp.eq.s32.totalorder %v3093_v47, %v3013_v16 }
 0x22e   :  { %v1044_v63 = vpop.xlane.xlu1 %1043  ;;  %v1093_v34 = vadd.f32 %v1035_v55, %v965_v1  ;;  %v2177_v55 = vld [vmem:[#allocation13 + $0x150] sm:$0xff]  ;;  %v1586_v6 = vadd.f32 %v1525_v46, %v2409_v21 }
 0x22f   :  { %v1096_v57 = vadd.f32 %v1044_v63, %v968_v60  ;;  %v2084_v60 = vpop.eup %2083  ;;  %v1462_v1 = vadd.f32 %v1460_v5, %v1399_v29  ;;  %v1499_v63 = vld [vmem:[#allocation2 + $0x58] sm:$0xff]  ;;  %v1502_v8 = vld [vmem:[#allocation2 + $0x70] sm:$0xff]  ;;  %v975_v29 = vld [vmem:[#allocation2 + $0xe0] sm:$0xff] }
 0x230   :  { %1126 = vst.msk [vmem:[#allocation2 + $0x90] sm:$0xff] %vm721_vm1, %v1093_v34  ;;  %v3100_v34 = vadd.s32 248, %v2959_v23  ;;  %v2086_v39 = vpop.eup %2085  ;;  %v1529_v4 = vmul.f32 0.6931472, %v2084_v60  ;;  %2099 = vlog2.f32 %v1499_v63  ;;  %v962_v5 = vld [vmem:[#allocation2 + $0x78] sm:$0xff] }
 0x231   :  { %1129 = vst.msk [vmem:[#allocation2 + $0xa8] sm:$0xff] %vm721_vm1, %v1096_v57  ;;  %578 = vxpose.xlu0.b32.cont [4/16] %v2175_v33, 128  ;;  %v1041_v26 = vpop.xlane.xlu0 %1040  ;;  %v973_v33 = vld [vmem:[#allocation2 + $0xd0] sm:$0xff]  ;;  %v1531_v53 = vmul.f32 0.6931472, %v2086_v39  ;;  %2101 = vlog2.f32 %v1500_v30 }
 0x232   :  { %v1050_v62 = vpop.xlane.xlu1 %1049  ;;  %v1095_v49 = vadd.f32 %v1041_v26, %v967_v12  ;;  %v1584_v12 = vadd.f32 %v1521_v10, %v2409_v21  ;;  %v2088_v26 = vpop.eup %2087  ;;  %vm1344_vm3 = vcmp.eq.s32.totalorder %v3100_v34, %v3013_v16  ;;  %2103 = vlog2.f32 %v1501_v32 }
 0x233   :  { %v1098_v52 = vadd.f32 %v1050_v62, %v970_v25  ;;  %v1401_v25 = vsel %vm1336_vm14, %v2779_v37, 0.0  ;;  %v976_v62 = vld [vmem:[#allocation2 + $0xe8] sm:$0xff]  ;;  %v2090_v38 = vpop.eup %2089  ;;  %v1589_v40 = vadd.f32 %v1531_v53, %v2409_v21  ;;  %2105 = vlog2.f32 %v1502_v8  ;;  %v1504_v50 = vld [vmem:[#allocation2 + $0x80] sm:$0xff] }
 0x234   :  { %1128 = vst.msk [vmem:[#allocation2 + $0xa0] sm:$0xff] %vm721_vm1, %v1095_v49  ;;  %v1464_v37 = vadd.f32 %v1462_v1, %v1401_v25  ;;  %v1587_v49 = vadd.f32 %v1527_v20, %v2409_v21  ;;  %v1617_v14 = vsel %vm721_vm1, %v1584_v12, 0.0  ;;  %v1696_v10 = vmul.f32 0.6931472, %v2090_v38  ;;  %v978_v25 = vld [vmem:[#allocation2 + $0xf8] sm:$0xff] }
 0x235   :  { %1131 = vst.msk [vmem:[#allocation2 + $0xb8] sm:$0xff] %vm721_vm1, %v1098_v52  ;;  %579 = vxpose.xlu0.b32.cont [5/16] %v2176_v13, 128  ;;  %v1047_v17 = vpop.xlane.xlu0 %1046  ;;  %v1618_v52 = vsel %vm721_vm1, %v1585_v54, 0.0  ;;  %v1588_v13 = vadd.f32 %v1529_v4, %v2409_v21  ;;  %v1405_v1 = vsel %vm1340_vm0, %v2806_v19, 0.0  ;;  %v1702_v4 = vsub.s32 0, %v2959_v23 }
 0x236   :  { %v1056_v42 = vpop.xlane.xlu1 %1055  ;;  %v1097_v36 = vadd.f32 %v1047_v17, %v969_v22  ;;  %v1533_v17 = vmul.f32 0.6931472, %v2088_v26  ;;  %v1622_v27 = vsel %vm721_vm1, %v1587_v49, 0.0  ;;  %v1626_v30 = vsel %vm721_vm1, %v1589_v40, 0.0 }
 0x237   :  { %v1100_v59 = vadd.f32 %v1056_v42, %v972_v35  ;;  %v2092_v35 = vpop.eup %2091  ;;  %v1620_v42 = vsel %vm721_vm1, %v1586_v6, 0.0  ;;  %v1697_v6 = vadd.f32 %v1696_v10, %v2409_v21  ;;  %v1706_v26 = vsub.s32 1, %v2959_v23  ;;  %v1506_v16 = vld [vmem:[#allocation2 + $0x90] sm:$0xff]  ;;  %v1507_v10 = vld [vmem:[#allocation2 + $0x98] sm:$0xff] }
 0x238   :  { %1130 = vst.msk [vmem:[#allocation2 + $0xb0] sm:$0xff] %vm721_vm1, %v1097_v36  ;;  %v1619_v36 = vadd.f32 %v1618_v52, %v1617_v14  ;;  %v1535_v46 = vmul.f32 0.6931472, %v2092_v35  ;;  %v1409_v53 = vsel %vm1344_vm3, %v2858_v9, 0.0  ;;  %2107 = vlog2.f32 %v1504_v50 }
 0x239   :  { %1133 = vst.msk [vmem:[#allocation2 + $0xc8] sm:$0xff] %vm721_vm1, %v1100_v59  ;;  %580 = vxpose.xlu0.b32.cont [6/16] %v2177_v55, 128  ;;  %v1053_v57 = vpop.xlane.xlu0 %1052  ;;  %v2094_v59 = vpop.eup %2093  ;;  %v1624_v55 = vsel %vm721_vm1, %v1588_v13, 0.0  ;;  %v1707_v13 = vrot.slane %v1697_v6, %v1706_v26 }
 0x23a   :  { %v1062_v0 = vpop.xlane.xlu1 %1061  ;;  %v1099_v2 = vadd.f32 %v1053_v57, %v971_v43  ;;  %v2179_v43 = vld [vmem:[#allocation13 + $0x170] sm:$0xff]  ;;  %v2096_v54 = vpop.eup %2095  ;;  %v1621_v20 = vadd.f32 %v1620_v42, %v1619_v36  ;;  %v1590_v57 = vadd.f32 %v1533_v17, %v2409_v21  ;;  %v1537_v39 = vmul.f32 0.6931472, %v2094_v59 }
 0x23b   :  { %v1102_v45 = vadd.f32 %v1062_v0, %v974_v15  ;;  %v1466_v15 = vadd.f32 %v1464_v37, %v1403_v51  ;;  %v2098_v12 = vpop.eup %2097  ;;  %v1703_v51 = vrot.slane %v1697_v6, %v1702_v4  ;;  %v2181_v42 = vld [vmem:[#allocation13 + $0x190] sm:$0xff] }
 0x23c   :  { %1132 = vst.msk [vmem:[#allocation2 + $0xc0] sm:$0xff] %vm721_vm1, %v1099_v2  ;;  %v977_v2 = vld [vmem:[#allocation2 + $0xf0] sm:$0xff]  ;;  %v1623_v47 = vadd.f32 %v1622_v27, %v1621_v20  ;;  %v2100_v52 = vpop.eup %2099  ;;  %v1541_v35 = vmul.f32 0.6931472, %v2098_v12  ;;  %v1712_v20 = vsel %vm1710_vm4, %v1707_v13, 0.0 }
 0x23d   :  { %1135 = vst.msk [vmem:[#allocation2 + $0xd8] sm:$0xff] %vm721_vm1, %v1102_v45  ;;  %581 = vxpose.xlu0.b32.cont [7/16] %v2178_v44, 128  ;;  %v1059_v58 = vpop.xlane.xlu0 %1058  ;;  %v1407_v45 = vsel %vm1342_vm2, %v2840_v24, 0.0  ;;  %v1468_v19 = vadd.f32 %v1466_v15, %v1405_v1  ;;  %v2180_v24 = vld [vmem:[#allocation13 + $0x180] sm:$0xff]  ;;  %v1628_v44 = vsel %vm721_vm1, %v1590_v57, 0.0  ;;  %v1543_v14 = vmul.f32 0.6931472, %v2100_v52 }
 0x23e   :  { %v1068_v61 = vpop.xlane.xlu1 %1067  ;;  %v1101_v3 = vadd.f32 %v1059_v58, %v973_v33  ;;  %v1539_v33 = vmul.f32 0.6931472, %v2096_v54  ;;  %v1625_v49 = vadd.f32 %v1624_v55, %v1623_v47  ;;  %v1592_v58 = vadd.f32 %v1537_v39, %v2409_v21  ;;  %v2182_v54 = vld [vmem:[#allocation13 + $0x1a0] sm:$0xff]  ;;  %v2183_v12 = vld [vmem:[#allocation13 + $0x1b0] sm:$0xff] }
 0x23f   :  { %v1104_v22 = vadd.f32 %v1068_v61, %v976_v62  ;;  %v1591_v62 = vadd.f32 %v1535_v46, %v2409_v21  ;;  %v1594_v59 = vadd.f32 %v1541_v35, %v2409_v21  ;;  %v1509_v55 = vld [vmem:[#allocation2 + $0xa8] sm:$0xff]  ;;  %v1510_v47 = vld [vmem:[#allocation2 + $0xb0] sm:$0xff] }
 0x240   :  { %1134 = vst.msk [vmem:[#allocation2 + $0xd0] sm:$0xff] %vm721_vm1, %v1101_v3  ;;  %v2102_v3 = vpop.eup %2101  ;;  %v1627_v23 = vadd.f32 %v1626_v30, %v1625_v49  ;;  %v1593_v34 = vadd.f32 %v1539_v33, %v2409_v21 }
 0x241   :  { %1137 = vst.msk [vmem:[#allocation2 + $0xe8] sm:$0xff] %vm721_vm1, %v1104_v22  ;;  %582 = vxpose.xlu0.b32.cont [8/16] %v2179_v43, 128  ;;  %v1065_v60 = vpop.xlane.xlu0 %1064  ;;  %v1505_v22 = vld [vmem:[#allocation2 + $0x88] sm:$0xff]  ;;  %v1630_v9 = vsel %vm721_vm1, %v1591_v62, 0.0  ;;  %v2104_v17 = vpop.eup %2103  ;;  %v1545_v36 = vmul.f32 0.6931472, %v2102_v3  ;;  %v1511_v62 = vld [vmem:[#allocation2 + $0xb8] sm:$0xff] }
 0x242   :  { %v1026_v48 = vpop.xlane.xlu1 %1025  ;;  %v1103_v0 = vadd.f32 %v1065_v60, %v975_v29  ;;  %v1629_v8 = vadd.f32 %v1628_v44, %v1627_v23  ;;  %2109 = vlog2.f32 %v1505_v22  ;;  %v1632_v29 = vsel %vm721_vm1, %v1592_v58, 0.0  ;;  %v2106_v27 = vpop.eup %2105  ;;  %v1513_v44 = vld [vmem:[#allocation2 + $0xc8] sm:$0xff] }
 0x243   :  { %v1090_v63 = vadd.f32 %v1026_v48, %v962_v5  ;;  %v1470_v5 = vadd.f32 %v1468_v19, %v1407_v45  ;;  %2111 = vlog2.f32 %v1506_v16  ;;  %v1711_v48 = vsel %vm1710_vm4, %v1703_v51, 0.0  ;;  %v2108_v4 = vpop.eup %2107  ;;  %v1512_v52 = vld [vmem:[#allocation2 + $0xc0] sm:$0xff] }
 0x244   :  { %1136 = vst.msk [vmem:[#allocation2 + $0xe0] sm:$0xff] %vm721_vm1, %v1103_v0  ;;  %v1631_v40 = vadd.f32 %v1630_v9, %v1629_v8  ;;  %v1634_v43 = vsel %vm721_vm1, %v1593_v34, 0.0  ;;  %v1595_v60 = vadd.f32 %v1543_v14, %v2409_v21  ;;  %v1547_v1 = vmul.f32 0.6931472, %v2104_v17  ;;  %v1515_v13 = vld [vmem:[#allocation2 + $0xd8] sm:$0xff] }
 0x245   :  { %1123 = vst.msk [vmem:[#allocation2 + $0x78] sm:$0xff] %vm721_vm1, %v1090_v63  ;;  %583 = vxpose.xlu0.b32.cont [9/16] %v2180_v24, 128  ;;  %v1071_v37 = vpop.xlane.xlu0 %1070  ;;  %v1472_v46 = vadd.f32 %v1470_v5, %v1409_v53  ;;  %v1508_v63 = vld [vmem:[#allocation2 + $0xa0] sm:$0xff]  ;;  %v1549_v57 = vmul.f32 0.6931472, %v2106_v27  ;;  %v1596_v39 = vadd.f32 %v1545_v36, %v2409_v21  ;;  %v1636_v45 = vsel %vm721_vm1, %v1594_v59, 0.0  ;;  %v2185_v5 = vld [vmem:[#allocation13 + $0x1d0] sm:$0xff] }
 0x246   :  { %v1074_v38 = vpop.xlane.xlu1 %1073  ;;  %v1105_v32 = vadd.f32 %v1071_v37, %v977_v2  ;;  %v1633_v0 = vadd.f32 %v1632_v29, %v1631_v40  ;;  %v1713_v2 = vadd.f32 %v1712_v20, %v1711_v48  ;;  %v1597_v19 = vadd.f32 %v1547_v1, %v2409_v21 }
 0x247   :  { %v1106_v61 = vadd.f32 %v1074_v38, %v978_v25  ;;  %v1638_v6 = vsel %vm721_vm1, %v1595_v60, 0.0  ;;  %v1598_v33 = vadd.f32 %v1549_v57, %v2409_v21  ;;  %v1640_v50 = vsel %vm721_vm1, %v1596_v39, 0.0  ;;  %v2184_v38 = vld [vmem:[#allocation13 + $0x1c0] sm:$0xff]  ;;  %v1514_v51 = vld [vmem:[#allocation2 + $0xd0] sm:$0xff] }
 0x248   :  { %1138 = vst.msk [vmem:[#allocation2 + $0xf0] sm:$0xff] %vm721_vm1, %v1105_v32  ;;  %v1635_v25 = vadd.f32 %v1634_v43, %v1633_v0  ;;  %v1553_v49 = vmul.f32 0.6931472, %v2108_v4  ;;  %v1642_v53 = vsel %vm721_vm1, %v1597_v19, 0.0  ;;  %v1517_v60 = vld [vmem:[#allocation2 + $0xe8] sm:$0xff]  ;;  %v2187_v57 = vld [vmem:[#allocation13 + $0x1f0] sm:$0xff] }
 0x249   :  { %1139 = vst.msk [vmem:[#allocation2 + $0xf8] sm:$0xff] %vm721_vm1, %v1106_v61  ;;  %584 = vxpose.xlu0.b32.cont [10/16] %v2181_v42, 128  ;;  %v1644_v22 = vsel %vm721_vm1, %v1598_v33, 0.0 }
 0x24a   :  { %v1637_v30 = vadd.f32 %v1636_v45, %v1635_v25  ;;  %v1600_v34 = vadd.f32 %v1553_v49, %v2409_v21 }
 0x24c   :  { %v1503_v15 = vld [vmem:[#allocation2 + $0x78] sm:$0xff]  ;;  %v2110_v24 = vpop.eup %2109  ;;  %v1639_v26 = vadd.f32 %v1638_v6, %v1637_v30 }
 0x24d   :  { %2113 = vlog2.f32 %v1503_v15  ;;  %585 = vxpose.xlu0.b32.cont [11/16] %v2182_v54, 128  ;;  %v2112_v37 = vpop.eup %2111  ;;  %v1555_v35 = vmul.f32 0.6931472, %v2110_v24  ;;  %v2186_v15 = vld [vmem:[#allocation13 + $0x1e0] sm:$0xff] }
 0x24e   :  { %2115 = vlog2.f32 %v1507_v10  ;;  %v1641_v61 = vadd.f32 %v1640_v50, %v1639_v26  ;;  %v1557_v16 = vmul.f32 0.6931472, %v2112_v37  ;;  %v1516_v10 = vld [vmem:[#allocation2 + $0xe0] sm:$0xff] }
 0x24f   :  { %1473 = vadd.xlane.f32.xlu1 %v1472_v46  ;;  %2117 = vlog2.f32 %v1508_v63  ;;  %v1601_v8 = vadd.f32 %v1555_v35, %v2409_v21  ;;  %v1648_v46 = vsel %vm721_vm1, %v1600_v34, 0.0  ;;  %v1518_v0 = vld [vmem:[#allocation2 + $0xf0] sm:$0xff] }
 0x250   :  { %2119 = vlog2.f32 %v1509_v55  ;;  %v1643_v23 = vadd.f32 %v1642_v53, %v1641_v61  ;;  %v1602_v40 = vadd.f32 %v1557_v16, %v2409_v21  ;;  %v1519_v39 = vld [vmem:[#allocation2 + $0xf8] sm:$0xff] }
 0x251   :  { %586 = vxpose.xlu0.b32.cont [12/16] %v2183_v12, 128  ;;  %2121 = vlog2.f32 %v1510_v47  ;;  %v1650_v20 = vsel %vm721_vm1, %v1601_v8, 0.0 }
 0x252   :  { %2123 = vlog2.f32 %v1511_v62  ;;  %v1645_v42 = vadd.f32 %v1644_v22, %v1643_v23  ;;  %v1652_v25 = vsel %vm721_vm1, %v1602_v40, 0.0 }
 0x253   :  { %1714 = vadd.xlane.f32.xlu1 %v1713_v2  ;;  %2125 = vlog2.f32 %v1512_v52 }
 0x254   :  { %2127 = vlog2.f32 %v1513_v44 }
 0x255   :  { %587 = vxpose.xlu0.b32.cont [13/16] %v2184_v38, 128  ;;  %2129 = vlog2.f32 %v1514_v51 }
 0x256   :  { %2131 = vlog2.f32 %v1515_v13 }
 0x257   :  { %v2114_v32 = vpop.eup %2113  ;;  %2133 = vlog2.f32 %v1516_v10 }
 0x258   :  { %v1551_v58 = vmul.f32 0.6931472, %v2114_v32  ;;  %v2116_v3 = vpop.eup %2115  ;;  %2135 = vlog2.f32 %v1517_v60 }
 0x259   :  { %588 = vxpose.xlu0.b32.cont [14/16] %v2185_v5, 128  ;;  %v2118_v14 = vpop.eup %2117  ;;  %v1559_v17 = vmul.f32 0.6931472, %v2116_v3  ;;  %2137 = vlog2.f32 %v1518_v0 }
 0x25a   :  { %v1599_v9 = vadd.f32 %v1551_v58, %v2409_v21  ;;  %v2120_v59 = vpop.eup %2119  ;;  %v1561_v27 = vmul.f32 0.6931472, %v2118_v14  ;;  %2139 = vlog2.f32 %v1519_v39 }
 0x25b   :  { %v2122_v48 = vpop.eup %2121  ;;  %v1563_v1 = vmul.f32 0.6931472, %v2120_v59  ;;  %v1603_v54 = vadd.f32 %v1559_v17, %v2409_v21 }
 0x25c   :  { %v1646_v29 = vsel %vm721_vm1, %v1599_v9, 0.0  ;;  %v2124_v63 = vpop.eup %2123  ;;  %v1565_v45 = vmul.f32 0.6931472, %v2122_v48  ;;  %v1604_v2 = vadd.f32 %v1561_v27, %v2409_v21 }
 0x25d   :  { %v1647_v36 = vadd.f32 %v1646_v29, %v1645_v42  ;;  %589 = vxpose.xlu0.b32.cont [15/16] %v2186_v15, 128  ;;  %v2126_v12 = vpop.eup %2125  ;;  %v1567_v19 = vmul.f32 0.6931472, %v2124_v63  ;;  %v1605_v6 = vadd.f32 %v1563_v1, %v2409_v21  ;;  %v1654_v4 = vsel %vm721_vm1, %v1603_v54, 0.0 }
 0x25e   :  { %v2128_v30 = vpop.eup %2127  ;;  %v1569_v33 = vmul.f32 0.6931472, %v2126_v12  ;;  %v1606_v50 = vadd.f32 %v1565_v45, %v2409_v21  ;;  %v1656_v24 = vsel %vm721_vm1, %v1604_v2, 0.0 }
 0x25f   :  { %v1649_v43 = vadd.f32 %v1648_v46, %v1647_v36  ;;  %v2130_v26 = vpop.eup %2129  ;;  %v1571_v38 = vmul.f32 0.6931472, %v2128_v30  ;;  %v1607_v52 = vadd.f32 %v1567_v19, %v2409_v21  ;;  %v1658_v49 = vsel %vm721_vm1, %v1605_v6, 0.0 }
 0x260   :  { %v2132_v53 = vpop.eup %2131  ;;  %v1573_v61 = vmul.f32 0.6931472, %v2130_v26  ;;  %v1608_v44 = vadd.f32 %v1569_v33, %v2409_v21  ;;  %v1660_v58 = vsel %vm721_vm1, %v1606_v50, 0.0 }
 0x261   :  { %v1651_v55 = vadd.f32 %v1650_v20, %v1649_v43  ;;  %590 = vxpose.xlu0.b32.end [16/16] %v2187_v57, 128  ;;  %v2134_v35 = vpop.eup %2133  ;;  %v1575_v3 = vmul.f32 0.6931472, %v2132_v53  ;;  %v1609_v23 = vadd.f32 %v1571_v38, %v2409_v21  ;;  %v1662_v5 = vsel %vm721_vm1, %v1607_v52, 0.0 }
 0x262   :  { %v2136_v16 = vpop.eup %2135  ;;  %v1577_v14 = vmul.f32 0.6931472, %v2134_v35  ;;  %v1610_v42 = vadd.f32 %v1573_v61, %v2409_v21  ;;  %v1664_v13 = vsel %vm721_vm1, %v1608_v44, 0.0 }
 0x263   :  { %v1653_v47 = vadd.f32 %v1652_v25, %v1651_v55  ;;  %v2138_v34 = vpop.eup %2137  ;;  %v1579_v59 = vmul.f32 0.6931472, %v2136_v16  ;;  %v1611_v36 = vadd.f32 %v1575_v3, %v2409_v21  ;;  %v1666_v15 = vsel %vm721_vm1, %v1609_v23, 0.0 }
 0x264   :  { %v2140_v8 = vpop.eup %2139  ;;  %v1581_v40 = vmul.f32 0.6931472, %v2138_v34  ;;  %v1612_v48 = vadd.f32 %v1577_v14, %v2409_v21  ;;  %v1668_v43 = vsel %vm721_vm1, %v1610_v42, 0.0 }
 0x265   :  { %v1655_v62 = vadd.f32 %v1654_v4, %v1653_v47  ;;  %v527_v17 = vpop.trf.xlu0  ;;  %v1583_v46 = vmul.f32 0.6931472, %v2140_v8  ;;  %v1613_v54 = vadd.f32 %v1579_v59, %v2409_v21  ;;  %v1670_v20 = vsel %vm721_vm1, %v1611_v36, 0.0  ;;  %v2189_v59 = vld [vmem:[#allocation13 + $0x188] sm:$0xff]  ;;  %v2190_v36 = vld [vmem:[#allocation13 + $0x198] sm:$0xff] }
 0x266   :  { %639 = vst [vmem:[#allocation14] sm:$0xff] %v527_v17  ;;  %v1614_v55 = vadd.f32 %v1581_v40, %v2409_v21  ;;  %v1672_v39 = vsel %vm721_vm1, %v1612_v48, 0.0 }
 0x267   :  { %v1657_v37 = vadd.f32 %v1656_v24, %v1655_v62  ;;  %v1615_v57 = vadd.f32 %v1583_v46, %v2409_v21  ;;  %v1674_v25 = vsel %vm721_vm1, %v1613_v54, 0.0 }
 0x268   :  { %v1676_v19 = vsel %vm721_vm1, %v1614_v55, 0.0  ;;  %v2195_v55 = vld [vmem:[#allocation13 + $0x1e8] sm:$0xff] }
 0x269   :  { %v1659_v32 = vadd.f32 %v1658_v49, %v1657_v37  ;;  %v528_v60 = vpop.trf.xlu0  ;;  %v1678_v6 = vsel %vm721_vm1, %v1615_v57, 0.0 }
 0x26a   :  { %641 = vst [vmem:[#allocation14 + $0x10] sm:$0xff] %v528_v60 }
 0x26b   :  { %v1661_v22 = vadd.f32 %v1660_v58, %v1659_v32 }
 0x26c   :  { %v559_v51 = vpop.trf.xlu1 }
 0x26d   :  { %v1663_v9 = vadd.f32 %v1662_v5, %v1661_v22  ;;  %671 = vst [vmem:[#allocation14 + $0x100] sm:$0xff] %v559_v51  ;;  %v529_v45 = vpop.trf.xlu0 }
 0x26e   :  { %643 = vst [vmem:[#allocation14 + $0x20] sm:$0xff] %v529_v45 }
 0x26f   :  { %v1665_v29 = vadd.f32 %v1664_v13, %v1663_v9 }
 0x270   :  { %v560_v10 = vpop.trf.xlu1 }
 0x271   :  { %v1667_v27 = vadd.f32 %v1666_v15, %v1665_v29  ;;  %673 = vst [vmem:[#allocation14 + $0x110] sm:$0xff] %v560_v10  ;;  %v530_v4 = vpop.trf.xlu0  ;;  %v2191_v15 = vld [vmem:[#allocation13 + $0x1a8] sm:$0xff] }
 0x272   :  { %645 = vst [vmem:[#allocation14 + $0x30] sm:$0xff] %v530_v4 }
 0x273   :  { %v1669_v1 = vadd.f32 %v1668_v43, %v1667_v27  ;;  %v2193_v43 = vld [vmem:[#allocation13 + $0x1c8] sm:$0xff] }
 0x274   :  { %v561_v63 = vpop.trf.xlu1 }
 0x275   :  { %v1671_v0 = vadd.f32 %v1670_v20, %v1669_v1  ;;  %675 = vst [vmem:[#allocation14 + $0x120] sm:$0xff] %v561_v63  ;;  %v531_v21 = vpop.trf.xlu0  ;;  %v2194_v20 = vld [vmem:[#allocation13 + $0x1d8] sm:$0xff] }
 0x276   :  { %647 = vst [vmem:[#allocation14 + $0x40] sm:$0xff] %v531_v21 }
 0x277   :  { %v1673_v2 = vadd.f32 %v1672_v39, %v1671_v0  ;;  %v2196_v39 = vld [vmem:[#allocation13 + $0x1f8] sm:$0xff] }
 0x278   :  { %v562_v12 = vpop.trf.xlu1 }
 0x279   :  { %v1675_v47 = vadd.f32 %v1674_v25, %v1673_v2  ;;  %677 = vst [vmem:[#allocation14 + $0x130] sm:$0xff] %v562_v12  ;;  %v532_v24 = vpop.trf.xlu0 }
 0x27a   :  { %649 = vst [vmem:[#allocation14 + $0x50] sm:$0xff] %v532_v24 }
 0x27b   :  { %v1677_v30 = vadd.f32 %v1676_v19, %v1675_v47 }
 0x27c   :  { %v563_v62 = vpop.trf.xlu1 }
 0x27d   :  { %v1679_v33 = vadd.f32 %v1678_v6, %v1677_v30  ;;  %679 = vst [vmem:[#allocation14 + $0x140] sm:$0xff] %v563_v62  ;;  %v533_v37 = vpop.trf.xlu0 }
 0x27e   :  { %651 = vst [vmem:[#allocation14 + $0x60] sm:$0xff] %v533_v37 }
 0x27f   :  { %1680 = vadd.xlane.f32.xlu1 %v1679_v33 }
 0x280   :  { %v564_v50 = vpop.trf.xlu1 }
 0x281   :  { %681 = vst [vmem:[#allocation14 + $0x150] sm:$0xff] %v564_v50  ;;  %v534_v53 = vpop.trf.xlu0 }
 0x282   :  { %653 = vst [vmem:[#allocation14 + $0x70] sm:$0xff] %v534_v53 }
 0x284   :  { %v565_v26 = vpop.trf.xlu1 }
 0x285   :  { %683 = vst [vmem:[#allocation14 + $0x160] sm:$0xff] %v565_v26  ;;  %v535_v61 = vpop.trf.xlu0 }
 0x286   :  { %655 = vst [vmem:[#allocation14 + $0x80] sm:$0xff] %v535_v61 }
 0x288   :  { %v566_v38 = vpop.trf.xlu1 }
 0x289   :  { %685 = vst [vmem:[#allocation14 + $0x170] sm:$0xff] %v566_v38  ;;  %v536_v58 = vpop.trf.xlu0 }
 0x28a   :  { %657 = vst [vmem:[#allocation14 + $0x90] sm:$0xff] %v536_v58 }
 0x28c   :  { %v567_v52 = vpop.trf.xlu1 }
 0x28d   :  { %687 = vst [vmem:[#allocation14 + $0x180] sm:$0xff] %v567_v52  ;;  %v537_v22 = vpop.trf.xlu0 }
 0x28e   :  { %659 = vst [vmem:[#allocation14 + $0xa0] sm:$0xff] %v537_v22 }
 0x290   :  { %v568_v49 = vpop.trf.xlu1 }
 0x291   :  { %689 = vst [vmem:[#allocation14 + $0x190] sm:$0xff] %v568_v49  ;;  %v538_v23 = vpop.trf.xlu0 }
 0x292   :  { %661 = vst [vmem:[#allocation14 + $0xb0] sm:$0xff] %v538_v23 }
 0x294   :  { %v569_v32 = vpop.trf.xlu1 }
 0x295   :  { %691 = vst [vmem:[#allocation14 + $0x1a0] sm:$0xff] %v569_v32  ;;  %v539_v51 = vpop.trf.xlu0 }
 0x296   :  { %663 = vst [vmem:[#allocation14 + $0xc0] sm:$0xff] %v539_v51 }
 0x298   :  { %v570_v44 = vpop.trf.xlu1 }
 0x299   :  { %693 = vst [vmem:[#allocation14 + $0x1b0] sm:$0xff] %v570_v44  ;;  %v540_v9 = vpop.trf.xlu0 }
 0x29a   :  { %665 = vst [vmem:[#allocation14 + $0xd0] sm:$0xff] %v540_v9 }
 0x29c   :  { %v571_v35 = vpop.trf.xlu1 }
 0x29d   :  { %695 = vst [vmem:[#allocation14 + $0x1c0] sm:$0xff] %v571_v35  ;;  %v541_v34 = vpop.trf.xlu0 }
 0x29e   :  { %667 = vst [vmem:[#allocation14 + $0xe0] sm:$0xff] %v541_v34 }
 0x2a0   :  { %v572_v3 = vpop.trf.xlu1 }
 0x2a1   :  { %697 = vst [vmem:[#allocation14 + $0x1d0] sm:$0xff] %v572_v3  ;;  %v542_v14 = vpop.trf.xlu0 }
 0x2a2   :  { %669 = vst [vmem:[#allocation14 + $0xf0] sm:$0xff] %v542_v14 }
 0x2a4   :  { %v573_v5 = vpop.trf.xlu1 }
 0x2a5   :  { %699 = vst [vmem:[#allocation14 + $0x1e0] sm:$0xff] %v573_v5  ;;  %v591_v42 = vpop.trf.xlu0 }
 0x2a6   :  { %640 = vst [vmem:[#allocation14 + $0x8] sm:$0xff] %v591_v42 }
 0x2a8   :  { %v574_v16 = vpop.trf.xlu1 }
 0x2a9   :  { %701 = vst [vmem:[#allocation14 + $0x1f0] sm:$0xff] %v574_v16  ;;  %v592_v13 = vpop.trf.xlu0 }
 0x2aa   :  { %642 = vst [vmem:[#allocation14 + $0x18] sm:$0xff] %v592_v13 }
 0x2ad   :  { %v593_v17 = vpop.trf.xlu0 }
 0x2ae   :  { %644 = vst [vmem:[#allocation14 + $0x28] sm:$0xff] %v593_v17 }
 0x2b1   :  { %v594_v8 = vpop.trf.xlu0 }
 0x2b2   :  { %607 = vxpose.xlu1.b32.start [1/16] %v3019_v18, 128  ;;  %646 = vst [vmem:[#allocation14 + $0x38] sm:$0xff] %v594_v8 }
 0x2b5   :  { %v595_v29 = vpop.trf.xlu0 }
 0x2b6   :  { %608 = vxpose.xlu1.b32.cont [2/16] %v3025_v11, 128  ;;  %648 = vst [vmem:[#allocation14 + $0x48] sm:$0xff] %v595_v29  ;;  %v2188_v11 = vld [vmem:[#allocation13 + $0x178] sm:$0xff] }
 0x2b9   :  { %v596_v18 = vpop.trf.xlu0 }
 0x2ba   :  { %609 = vxpose.xlu1.b32.cont [3/16] %v3032_v41, 128  ;;  %650 = vst [vmem:[#allocation14 + $0x58] sm:$0xff] %v596_v18 }
 0x2bd   :  { %v597_v41 = vpop.trf.xlu0 }
 0x2be   :  { %610 = vxpose.xlu1.b32.cont [4/16] %v3038_v7, 128  ;;  %652 = vst [vmem:[#allocation14 + $0x68] sm:$0xff] %v597_v41 }
 0x2c1   :  { %v598_v7 = vpop.trf.xlu0 }
 0x2c2   :  { %611 = vxpose.xlu1.b32.cont [5/16] %v3047_v31, 128  ;;  %654 = vst [vmem:[#allocation14 + $0x78] sm:$0xff] %v598_v7 }
 0x2c5   :  { %v599_v31 = vpop.trf.xlu0 }
 0x2c6   :  { %612 = vxpose.xlu1.b32.cont [6/16] %v3055_v56, 128  ;;  %656 = vst [vmem:[#allocation14 + $0x88] sm:$0xff] %v599_v31 }
 0x2c9   :  { %v600_v56 = vpop.trf.xlu0 }
 0x2ca   :  { %613 = vxpose.xlu1.b32.cont [7/16] %v3062_v28, 128  ;;  %658 = vst [vmem:[#allocation14 + $0x98] sm:$0xff] %v600_v56  ;;  %v2192_v28 = vld [vmem:[#allocation13 + $0x1b8] sm:$0xff] }
 0x2cd   :  { %v601_v40 = vpop.trf.xlu0 }
 0x2ce   :  { %614 = vxpose.xlu1.b32.cont [8/16] %v2188_v11, 128  ;;  %660 = vst [vmem:[#allocation14 + $0xa8] sm:$0xff] %v601_v40 }
 0x2d1   :  { %v602_v60 = vpop.trf.xlu0 }
 0x2d2   :  { %615 = vxpose.xlu1.b32.cont [9/16] %v2189_v59, 128  ;;  %662 = vst [vmem:[#allocation14 + $0xb8] sm:$0xff] %v602_v60 }
 0x2d5   :  { %v603_v63 = vpop.trf.xlu0 }
 0x2d6   :  { %616 = vxpose.xlu1.b32.cont [10/16] %v2190_v36, 128  ;;  %664 = vst [vmem:[#allocation14 + $0xc8] sm:$0xff] %v603_v63 }
 0x2d9   :  { %v604_v57 = vpop.trf.xlu0 }
 0x2da   :  { %617 = vxpose.xlu1.b32.cont [11/16] %v2191_v15, 128  ;;  %666 = vst [vmem:[#allocation14 + $0xd8] sm:$0xff] %v604_v57 }
 0x2dc   :  { %v1474_v10 = vpop.xlane.xlu1 %1473 }
 0x2dd   :  { %v1475_v27 = vrot.slane %v1474_v10, 4  ;;  %v605_v45 = vpop.trf.xlu0 }
 0x2de   :  { %618 = vxpose.xlu1.b32.cont [12/16] %v2192_v28, 128  ;;  %668 = vst [vmem:[#allocation14 + $0xe8] sm:$0xff] %v605_v45 }
 0x2df   :  { %v1476_v46 = vadd.f32 %v1475_v27, %v1474_v10 }
 0x2e1   :  { %v1477_v48 = vrot.slane %v1476_v46, 2  ;;  %v606_v2 = vpop.trf.xlu0 }
 0x2e2   :  { %619 = vxpose.xlu1.b32.cont [13/16] %v2193_v43, 128 }
 0x2e3   :  { %v1478_v1 = vadd.f32 %v1477_v48, %v1476_v46 }
 0x2e5   :  { %v1479_v54 = vrot.slane %v1478_v1, 1 }
 0x2e6   :  { %620 = vxpose.xlu1.b32.cont [14/16] %v2194_v20, 128 }
 0x2e7   :  { %v1480_v0 = vadd.f32 %v1479_v54, %v1478_v1 }
 0x2e9   :  { %1929 = vpush %v1480_v0 }
 0x2ea   :  { %621 = vxpose.xlu1.b32.cont [15/16] %v2195_v55, 128 }
 0x2ee   :  { %622 = vxpose.xlu1.b32.end [16/16] %v2196_v39, 128 }
 0x2ef   :  { %2262 = shalt.err (!%p2259_p9)
}
 0x2f0   :  { %s2263_s8 = scalar_lea.hbm %s3255_s3, 8192 }
 0x2f1   :  { %p2264_p10 = scmp.ne.s32.totalorder %s3255_s3, %s2263_s8  ;;  %p2267_p11 = scmp.lt.u32.totalorder %s2263_s8, %s3255_s3 }
 0x2f3   :  { %p2269_p12 = pnand %p2267_p11, %p2264_p10 }
 0x2f5   :  { %2272 = shalt.err (!%p2269_p12)
}
 0x2f6   :  { %s2325_s0 = smov 256   ;;  %s2326_s13 = smov 16   ;;  %670 = vst [vmem:[#allocation14 + $0xf8] sm:$0xff] %v606_v2  ;;  %v1715_v25 = vpop.xlane.xlu1 %1714 }
 0x2f7   :  { %1745 = dma.vmem_to_hbm [thread:$0]  %s1740_s29, 8192, %s3255_s3, [#allocation7], %s2325_s0, %s2325_s0, %s2326_s13   ;;  %v1716_v12 = vrot.slane %v1715_v25, 4 }
 0x2f8   :  { %s2273_s24 = scalar_lea.hbm %s3257_s5, 16 }
 0x2f9   :  { %v1717_v47 = vadd.f32 %v1716_v12, %v1715_v25  ;;  %p2274_p13 = scmp.ne.s32.totalorder %s3257_s5, %s2273_s24  ;;  %p2277_p0 = scmp.lt.u32.totalorder %s2273_s24, %s3257_s5 }
 0x2fb   :  { %v1718_v19 = vrot.slane %v1717_v47, 2  ;;  %p2279_p1 = pnand %p2277_p0, %p2274_p13 }
 0x2fd   :  { %v1719_v62 = vadd.f32 %v1718_v19, %v1717_v47 }
 0x2ff   :  { %v1720_v50 = vrot.slane %v1719_v62, 1 }
 0x301   :  { %v1721_v37 = vadd.f32 %v1720_v50, %v1719_v62 }
 0x30c   :  { %v1681_v6 = vpop.xlane.xlu1 %1680 }
 0x30d   :  { %v1682_v4 = vrot.slane %v1681_v6, 4 }
 0x30f   :  { %v1683_v30 = vadd.f32 %v1682_v4, %v1681_v6 }
 0x311   :  { %v1684_v33 = vrot.slane %v1683_v30, 2 }
 0x313   :  { %v1685_v21 = vadd.f32 %v1684_v33, %v1683_v30 }
 0x315   :  { %v1686_v24 = vrot.slane %v1685_v21, 1 }
 0x317   :  { %v1687_v26 = vadd.f32 %v1686_v24, %v1685_v21 }
 0x319   :  { %1931 = vpush %v1687_v26 }
 0x31a   :  { %1933 = vpush %v1721_v37  ;;  %s1930_s3 = spop %1929 }
 0x31b   :  { %s1730_s19 = smul.f32 0.00390625, %s1930_s3 }
 0x332   :  { %v623_v38 = vpop.trf.xlu1 }
 0x333   :  { %672 = vst [vmem:[#allocation14 + $0x108] sm:$0xff] %v623_v38 }
 0x336   :  { %v624_v52 = vpop.trf.xlu1 }
 0x337   :  { %674 = vst [vmem:[#allocation14 + $0x118] sm:$0xff] %v624_v52 }
 0x33a   :  { %v625_v49 = vpop.trf.xlu1 }
 0x33b   :  { %676 = vst [vmem:[#allocation14 + $0x128] sm:$0xff] %v625_v49 }
 0x33e   :  { %v626_v53 = vpop.trf.xlu1 }
 0x33f   :  { %678 = vst [vmem:[#allocation14 + $0x138] sm:$0xff] %v626_v53 }
 0x342   :  { %v627_v32 = vpop.trf.xlu1 }
 0x343   :  { %680 = vst [vmem:[#allocation14 + $0x148] sm:$0xff] %v627_v32 }
 0x346   :  { %v628_v61 = vpop.trf.xlu1 }
 0x347   :  { %682 = vst [vmem:[#allocation14 + $0x158] sm:$0xff] %v628_v61 }
 0x34a   :  { %s1932_s16 = spop %1931  ;;  %v629_v44 = vpop.trf.xlu1 }
 0x34b   :  { %s1934_s17 = spop %1933  ;;  %684 = vst [vmem:[#allocation14 + $0x168] sm:$0xff] %v629_v44 }
 0x34c   :  { %s1723_s18 = sadd.f32 %s1934_s17, %s1932_s16 }
 0x34e   :  { %s1726_s20 = smul.f32 0.001953125, %s1723_s18  ;;  %v630_v58 = vpop.trf.xlu1 }
 0x34f   :  { %686 = vst [vmem:[#allocation14 + $0x178] sm:$0xff] %v630_v58 }
 0x350   :  { %s1731_s21 = ssub.f32 %s1726_s20, %s1730_s19 }
 0x352   :  { %v631_v35 = vpop.trf.xlu1  ;;  %1733 = sst [smem:[#allocation16]] %s1731_s21 }
 0x353   :  { %688 = vst [vmem:[#allocation14 + $0x188] sm:$0xff] %v631_v35 }
 0x354   :  { %2282 = shalt.err (!%p2279_p1)
}
 0x355   :  { %s2327_s27 = smov [#allocation16]   ;;  %s2328_s30 = smov [#allocation14]  }
 0x356   :  { %1765 = dma.smem_to_hbm %s2327_s27, 16, %s3257_s5, [#allocation9]   ;;  %v632_v22 = vpop.trf.xlu1 }
 0x357   :  { %690 = vst [vmem:[#allocation14 + $0x198] sm:$0xff] %v632_v22  ;;  %s1751_s6 = sshll.u32 %s2328_s30, 4  ;;  %s1752_s6 = int_to_ptr.vmem [resolvable:$true] %s1751_s6 }
 0x358   :  { %s2283_s7 = scalar_lea.vmem %s1752_s6, 8192  ;;  %p2288_p3 = scmp.lt.s32.totalorder %s1752_s6, %s1752_s6 }
 0x359   :  { %p2284_p2 = scmp.ne.s32.totalorder %s1752_s6, %s2283_s7  ;;  %p2289_p4 = scmp.lt.s32.totalorder %s2283_s7, %s2283_s7 }
 0x35a   :  { %v633_v3 = vpop.trf.xlu1 }
 0x35b   :  { %692 = vst [vmem:[#allocation14 + $0x1a8] sm:$0xff] %v633_v3  ;;  %p2290_p5 = por %p2289_p4, %p2288_p3 }
 0x35d   :  { %p2291_p6 = pnand %p2290_p5, %p2284_p2 }
 0x35e   :  { %v634_v23 = vpop.trf.xlu1 }
 0x35f   :  { %694 = vst [vmem:[#allocation14 + $0x1b8] sm:$0xff] %v634_v23 }
 0x362   :  { %v635_v5 = vpop.trf.xlu1 }
 0x363   :  { %696 = vst [vmem:[#allocation14 + $0x1c8] sm:$0xff] %v635_v5 }
 0x366   :  { %v636_v51 = vpop.trf.xlu1 }
 0x367   :  { %698 = vst [vmem:[#allocation14 + $0x1d8] sm:$0xff] %v636_v51 }
 0x36a   :  { %v637_v16 = vpop.trf.xlu1 }
 0x36b   :  { %700 = vst [vmem:[#allocation14 + $0x1e8] sm:$0xff] %v637_v16 }
 0x36e   :  { %v638_v9 = vpop.trf.xlu1 }
 0x36f   :  { %702 = vst [vmem:[#allocation14 + $0x1f8] sm:$0xff] %v638_v9 }
 0x370   :  { %2294 = shalt.err (!%p2291_p6)
}
 0x371   :  { %s2295_s9 = scalar_lea.hbm %s3256_s4, 8192 }
 0x372   :  { %p2296_p7 = scmp.ne.s32.totalorder %s3256_s4, %s2295_s9  ;;  %p2299_p8 = scmp.lt.u32.totalorder %s2295_s9, %s3256_s4 }
 0x374   :  { %p2301_p9 = pnand %p2299_p8, %p2296_p7 }
 0x376   :  { %2304 = shalt.err (!%p2301_p9)
}
 0x377   :  { %1757 = dma.vmem_to_hbm [thread:$0]  %s1752_s6, 8192, %s3256_s4, [#allocation15], %s2325_s0, %s2325_s0, %s2326_s13  }
 0x378   :  { %2311 = dma.done.wait [#allocation7], 8192  }
 0x379   :  { %2312 = vsyncadd [#allocation7], 4294959104 }
 0x37a   :  { %2313 = dma.done.wait [#allocation15], 8192  }
 0x37b   :  { %2314 = vsyncadd [#allocation15], 4294959104 }
 0x37c   :  { %2315 = dma.done.wait [#allocation9], 16  }
 0x37d   :  { %2316 = vsyncadd [#allocation9], 4294967280 }
 0x37e   :  { %1775 = sfence }
 0x37f   :  { %1776 = vsyncpa [#allocation6], 1 }
 0x380   :  { %1777 = vsyncpa [#allocation12], 1 }
 0x381   :  { %1778 = vsyncpa [#allocation7], 1 }
 0x382   :  { %1779 = vsyncpa [#allocation15], 1 }
 0x383   :  { %1780 = vsyncpa [#allocation8], 1 }
 0x384   :  { %1781 = vsyncpa [#allocation9], 1 }

</bundles_post_ra>
